<compile_context>
chip_gen: v5e
topology: v5e:2x2
jax: 0.10.0
libtpu: 0.0.40
codegen_flags: <defaults>
</compile_context>

<pallas_src>
import functools
import math

import jax
import jax.numpy as jnp
from jax.experimental import pallas as pl
from jax.experimental.pallas import tpu as pltpu

_MIB = 1024 * 1024
_MAX_BATCH_TILE = 256        # MXU M-dim target for large batches
_MAX_UNROLLED_STORES = 256   # cap on the lane-dense per-network store unroll


def _round_up(x, m):
    return (x + m - 1) // m * m


def _padded_elems(shape):
    """Element count of a VMEM block after (8, 128) tile padding of the minor dims."""
    s = list(shape)
    if len(s) >= 1:
        s[-1] = _round_up(s[-1], 128)
    if len(s) >= 2:
        s[-2] = _round_up(s[-2], 8)
    n = 1
    for d in s:
        n *= d
    return n


@functools.lru_cache(maxsize=None)
def _chip_config():
    """(working-set budget, default vmem_limit_bytes, prefer >=2 grid steps, capacity).

    128 MiB-VMEM parts (v5e/v6e, one TensorCore): large blocks, no forced grid split.
    64 MiB parts (v7x, two TensorCores): conservative budget, prefer >=2 parallel steps.
    """
    try:
        cap = int(pltpu.get_tpu_info().vmem_capacity_bytes)
    except Exception:
        cap = 64 * _MIB
    if cap >= 100 * _MIB:
        return 48 * _MIB, 64 * _MIB, False, cap
    return 20 * _MIB, 32 * _MIB, True, cap


# ------------------------------- kernels ----------------------------------------


def _make_general_kernel(has_bias, lane_dense, lr_mul, out_dims):
    """out[b, n, :] = lr_mul * (W[n] @ x[b, n, :] + bias[n]) for a (bt, nb) block."""

    def kernel(*refs):
        if has_bias:
            x_ref, w_ref, b_ref, o_ref = refs
        else:
            x_ref, w_ref, o_ref = refs
            b_ref = None
        # Lowers to nb small (bt x I)x(I x O) MXU matmuls; for small I/O the kernel is
        # HBM-bound on all generations, so MXU padding is free (see perf review).
        acc = jnp.einsum("bni,noi->bno", x_ref[...], w_ref[...],
                         preferred_element_type=jnp.float32)
        if b_ref is not None:
            acc = acc + b_ref[...].astype(jnp.float32)[None, :, :]
        if lr_mul != 1.0:                      # static branch, folded at trace time
            acc = acc * jnp.float32(lr_mul)
        out = acc.astype(o_ref.dtype)
        if lane_dense:
            # o_ref is a lane-dense (bt, nb*out_dims) slab: per-network slices go to
            # static lane offsets so the HBM writeback DMA reads full 128-lane rows.
            nb = out.shape[1]
            for n in range(nb):
                o_ref[:, n * out_dims:(n + 1) * out_dims] = out[:, n, :]
        else:
            o_ref[...] = out

    return kernel


def _make_bcast_kernel(has_bias, lr_mul):
    """x shared by all networks: one (bt, I) x (nb*O, I)^T MXU matmul, dense output."""

    def kernel(*refs):
        if has_bias:
            x_ref, w_ref, b_ref, o_ref = refs
        else:
            x_ref, w_ref, o_ref = refs
            b_ref = None
        acc = jnp.einsum("bi,ki->bk", x_ref[...], w_ref[...],
                         preferred_element_type=jnp.float32)
        if b_ref is not None:
            acc = acc + b_ref[...].astype(jnp.float32)
        if lr_mul != 1.0:
            acc = acc * jnp.float32(lr_mul)
        o_ref[...] = acc.astype(o_ref.dtype)

    return kernel


@functools.lru_cache(maxsize=None)
def _lane_dense_store_ok(out_dims, dtype_name):
    """Feature probe: can Mosaic store (bt, O) values at unaligned lane offsets of a
    lane-dense output block?  Runs one tiny kernel; on any failure the caller falls
    back to the padded (bt, nb, O) output layout, so the wrapper always runs."""
    try:
        dtype = jnp.dtype(dtype_name)
        bt, nb, in_d = 8, 4, 8
        kernel = _make_general_kernel(False, True, 1.0, out_dims)
        x = jnp.zeros((bt, nb, in_d), dtype)
        w = jnp.zeros((nb, out_dims, in_d), dtype)
        out = pl.pallas_call(
            kernel,
            out_shape=jax.ShapeDtypeStruct((bt, nb * out_dims), dtype),
            grid_spec=pltpu.PrefetchScalarGridSpec(
                num_scalar_prefetch=0,
                grid=(1, 1),
                in_specs=[pl.BlockSpec((bt, nb, in_d), lambda n, b: (b, n, 0)),
                          pl.BlockSpec((nb, out_dims, in_d), lambda n, b: (n, 0, 0))],
                out_specs=pl.BlockSpec((bt, nb * out_dims), lambda n, b: (b, n))),
        )(x, w)
        jax.block_until_ready(out)
        return True
    except Exception:
        return False


# ----------------------------- block selection -----------------------------------


def _general_ws(bt, in_dims, out_dims, itemsize, has_bias):
    def ws(nb):
        dbuf = 2 * itemsize * (_padded_elems((bt, nb, in_dims))
                               + _padded_elems((nb, out_dims, in_dims))
                               + _padded_elems((bt, nb, out_dims))
                               + (_padded_elems((nb, out_dims)) if has_bias else 0))
        f32_tmp = 4 * (_padded_elems((bt, nb, out_dims))
                       + (_padded_elems((nb, out_dims)) if has_bias else 0))
        return dbuf + f32_tmp
    return ws


def _bcast_ws(bt, in_dims, out_dims, itemsize, has_bias):
    def ws(nb):
        k = nb * out_dims
        dbuf = 2 * itemsize * (_padded_elems((bt, in_dims))
                               + _padded_elems((k, in_dims))
                               + _padded_elems((bt, k))
                               + (_padded_elems((1, k)) if has_bias else 0))
        return dbuf + 4 * _padded_elems((bt, k))
    return ws


def _choose_nb(n_nets, fits, prefer_split):
    """Largest network-block (multiple of 8, or the full axis) whose padded working
    set fits the budget; on v7x-class chips keep >= 2 blocks so both cores get work."""
    if n_nets <= 8:
        return n_nets

    def nb_of(k):
        return min(8 * k, n_nets)

    max_k = (n_nets + 7) // 8
    if not fits(nb_of(1)):
        nb = nb_of(1)                      # nothing fits; take the smallest block
    else:
        lo, hi = 1, max_k                  # working set is monotone in nb
        while lo < hi:
            mid = (lo + hi + 1) // 2
            if fits(nb_of(mid)):
                lo = mid
            else:
                hi = mid - 1
        nb = nb_of(lo)
    if prefer_split and nb >= n_nets:
        half_k = max(1, ((n_nets + 1) // 2) // 8)
        nb = nb_of(half_k)
        if nb >= n_nets:
            nb = 8
    return nb


def _lane_req(out_dims):
    """nb must be a multiple of this for nb*out_dims to be a multiple of 128 (and 8)."""
    need = 128 // math.gcd(out_dims, 128)
    return (8 * need) // math.gcd(8, need)


# --------------------------------- wrapper ----------------------------------------


def multivar_linear(x, weight, bias, extra_dims, *, lr_mul=1.0):
    """Pallas implementation of MultivarLinear.forward.

    x      : [batch, *x_extra_dims, input_dims]  (x_extra_dims is a suffix of extra_dims)
    weight : [*extra_dims, output_dims, input_dims]
    bias   : [*extra_dims, output_dims] or None
    returns: [batch, *extra_dims, output_dims]
    """
    extra_dims = tuple(int(d) for d in extra_dims)
    out_dims, in_dims = int(weight.shape[-2]), int(weight.shape[-1])
    batch = int(x.shape[0])
    x_extra = tuple(int(d) for d in x.shape[1:-1])
    for i in range(len(x_extra)):
        assert x_extra[-(i + 1)] == extra_dims[-(i + 1)], "Shape mismatch"
    missing = len(extra_dims) - len(x_extra)
    n_nets = math.prod(extra_dims) if extra_dims else 1

    has_bias = bias is not None
    w_nm = weight.reshape(n_nets, out_dims, in_dims)             # (N, O, I) — free
    b_nm = bias.reshape(n_nets, out_dims) if has_bias else None  # (N, O)
    out_dtype = x.dtype
    itemsize = max(x.dtype.itemsize, weight.dtype.itemsize)

    budget, vmem_limit, prefer_split_chip, vmem_cap = _chip_config()
    bt = batch if batch <= _MAX_BATCH_TILE else _MAX_BATCH_TILE
    b_blocks = pl.cdiv(batch, bt)
    prefer_split = prefer_split_chip and b_blocks == 1
    flops = int(2 * batch * n_nets * out_dims * in_dims)

    # ---- broadcast path: x carries none of the extra dims (torch unsqueeze loop).
    # Keep x un-broadcast in HBM and contract it against the flattened weight; the
    # output block is natively lane-dense and the MXU sees one (bt, I)x(I, nb*O) matmul.
    if missing == len(extra_dims) and missing > 0:
        ws_fn = _bcast_ws(bt, in_dims, out_dims, itemsize, has_bias)
        nb = _choose_nb(n_nets, lambda m: ws_fn(m) <= budget, prefer_split)
        if nb != n_nets and (nb * out_dims) % 128 != 0:
            req = _lane_req(out_dims)
            nb = (nb // req) * req if nb >= req else 0
        if nb > 0:
            x2d = x.reshape(batch, in_dims)
            w_flat = w_nm.reshape(n_nets * out_dims, in_dims)          # free reshape
            in_specs = [pl.BlockSpec((bt, in_dims), lambda n, b: (b, 0)),
                        pl.BlockSpec((nb * out_dims, in_dims), lambda n, b: (n, 0))]
            operands = [x2d, w_flat]
            if has_bias:
                b_flat = b_nm.reshape(1, n_nets * out_dims)
                in_specs.append(pl.BlockSpec((1, nb * out_dims), lambda n, b: (0, n)))
                operands.append(b_flat)
            ws = ws_fn(nb)
            vmem_eff = max(vmem_limit, min(vmem_cap, ws + 16 * _MIB))
            bytes_acc = int((x2d.size + w_flat.size
                             + (b_nm.size if has_bias else 0)
                             + batch * n_nets * out_dims) * itemsize)
            out = pl.pallas_call(
                _make_bcast_kernel(has_bias, float(lr_mul)),
                out_shape=jax.ShapeDtypeStruct((batch, n_nets * out_dims), out_dtype),
                grid_spec=pltpu.PrefetchScalarGridSpec(
                    num_scalar_prefetch=0,
                    grid=(pl.cdiv(n_nets, nb), b_blocks),
                    in_specs=in_specs,
                    out_specs=pl.BlockSpec((bt, nb * out_dims), lambda n, b: (b, n))),
                compiler_params=pltpu.CompilerParams(
                    dimension_semantics=("parallel", "parallel"),
                    vmem_limit_bytes=vmem_eff),
                cost_estimate=pl.CostEstimate(flops=flops, transcendentals=0,
                                              bytes_accessed=bytes_acc),
            )(*operands)
            return out.reshape((batch,) + extra_dims + (out_dims,))
        # fall through to the general path with a materialized broadcast

    # ---- general path ----------------------------------------------------------
    if missing > 0:
        # TODO(synk): avoid this HBM broadcast when x is missing only SOME leading
        # extra dims (reuse one x block via the index_map, as done for the full case).
        x = jnp.broadcast_to(
            x.reshape((batch,) + (1,) * missing + x_extra + (in_dims,)),
            (batch,) + extra_dims + (in_dims,))
    x_bm = x.reshape(batch, n_nets, in_dims)                     # (B, N, I) — free

    ws_fn = _general_ws(bt, in_dims, out_dims, itemsize, has_bias)
    nb = _choose_nb(n_nets, lambda m: ws_fn(m) <= budget, prefer_split)

    lane_dense = False
    if out_dims % 128 != 0:                  # padded-lane stores would be masked
        req = _lane_req(out_dims)
        nb_d = nb if nb == n_nets else (nb // req) * req
        geom_ok = (nb_d == n_nets) or (nb_d >= req and (nb_d * out_dims) % 128 == 0)
        if (geom_ok and nb_d <= _MAX_UNROLLED_STORES
                and _lane_dense_store_ok(out_dims, jnp.dtype(out_dtype).name)):
            nb = nb_d
            lane_dense = True

    n_blocks = pl.cdiv(n_nets, nb)
    # TODO(synk): sweep pipeline_mode=pl.Buffered(3) on the weight stream if a profile
    # shows exposed DMA and the corrected VMEM accounting leaves headroom.
    in_specs = [pl.BlockSpec((bt, nb, in_dims), lambda n, b: (b, n, 0)),
                pl.BlockSpec((nb, out_dims, in_dims), lambda n, b: (n, 0, 0))]
    operands = [x_bm, w_nm]
    if has_bias:
        in_specs.append(pl.BlockSpec((nb, out_dims), lambda n, b: (n, 0)))
        operands.append(b_nm)
    if lane_dense:
        out_shape = jax.ShapeDtypeStruct((batch, n_nets * out_dims), out_dtype)
        out_spec = pl.BlockSpec((bt, nb * out_dims), lambda n, b: (b, n))
    else:
        out_shape = jax.ShapeDtypeStruct((batch, n_nets, out_dims), out_dtype)
        out_spec = pl.BlockSpec((bt, nb, out_dims), lambda n, b: (b, n, 0))

    ws = ws_fn(nb)
    vmem_eff = max(vmem_limit, min(vmem_cap, ws + 16 * _MIB))
    bytes_acc = int((x_bm.size + w_nm.size + (b_nm.size if has_bias else 0)
                     + batch * n_nets * out_dims) * itemsize)
    out = pl.pallas_call(
        _make_general_kernel(has_bias, lane_dense, float(lr_mul), out_dims),
        out_shape=out_shape,
        grid_spec=pltpu.PrefetchScalarGridSpec(
            num_scalar_prefetch=0,
            grid=(n_blocks, b_blocks),        # batch inner: weight block stays resident
            in_specs=in_specs,
            out_specs=out_spec),
        compiler_params=pltpu.CompilerParams(
            dimension_semantics=("parallel", "parallel"),
            vmem_limit_bytes=vmem_eff),
        cost_estimate=pl.CostEstimate(flops=flops, transcendentals=0,
                                      bytes_accessed=bytes_acc),
    )(*operands)
    return out.reshape((batch,) + extra_dims + (out_dims,))


def init_params(key, extra_dims, output_dims, input_dims, lr_mul=1.0, bias=True,
                dtype=jnp.float32):
    """Kaiming-uniform-style init matching the torch module's __init__."""
    extra_dims = tuple(extra_dims)
    wkey, _ = jax.random.split(key)
    full_shape = extra_dims + (output_dims, input_dims)
    fan_in = 1
    for d in full_shape[1:]:
        fan_in *= d
    bound = (2.0 ** 0.5) * (3.0 ** 0.5) / (fan_in ** 0.5)
    weight = jax.random.uniform(wkey, full_shape, dtype, -bound, bound) / lr_mul
    b = jnp.zeros(extra_dims + (output_dims,), dtype) if bias else None
    return weight, b


if __name__ == "__main__":
    # Small config: batch=4, extra_dims=[16] independent networks, in=32, out=32.
    batch, n_nets, input_dims, output_dims = 4, 16, 32, 32
    lr_mul = 2.0
    key = jax.random.PRNGKey(0)
    kx, kp, kb = jax.random.split(key, 3)

    x = jax.random.normal(kx, (batch, n_nets, input_dims), jnp.float32)
    weight, _ = init_params(kp, [n_nets], output_dims, input_dims, lr_mul=lr_mul)
    bias = 0.1 * jax.random.normal(kb, (n_nets, output_dims), jnp.float32)

    # --- bias case (general path, lane-dense output when supported) ---
    out = jax.block_until_ready(
        multivar_linear(x, weight, bias, [n_nets], lr_mul=lr_mul))
    ref = jnp.einsum("bni,noi->bno", x, weight * lr_mul) + (bias * lr_mul)[None]
    assert out.shape == (batch, n_nets, output_dims)
    assert jnp.allclose(out, ref, atol=1e-4, rtol=1e-4)

    # --- no-bias case ---
    out_nb = jax.block_until_ready(
        multivar_linear(x, weight, None, [n_nets], lr_mul=lr_mul))
    ref_nb = jnp.einsum("bni,noi->bno", x, weight * lr_mul)
    assert jnp.allclose(out_nb, ref_nb, atol=1e-4, rtol=1e-4)

    # --- broadcast case: x without the extra dim (no HBM broadcast, flat matmul) ---
    x0 = jax.random.normal(kx, (batch, input_dims), jnp.float32)
    out_b = jax.block_until_ready(
        multivar_linear(x0, weight, bias, [n_nets], lr_mul=lr_mul))
    ref_b = jnp.einsum("bi,noi->bno", x0, weight * lr_mul) + (bias * lr_mul)[None]
    assert out_b.shape == (batch, n_nets, output_dims)
    assert jnp.allclose(out_b, ref_b, atol=1e-4, rtol=1e-4)

    # --- bf16 streams (halves HBM bytes on bandwidth-limited parts; f32 accumulation) ---
    xh = x.astype(jnp.bfloat16)
    wh = weight.astype(jnp.bfloat16)
    bh = bias.astype(jnp.bfloat16)
    out_h = jax.block_until_ready(
        multivar_linear(xh, wh, bh, [n_nets], lr_mul=lr_mul))
    ref_h = (jnp.einsum("bni,noi->bno", xh.astype(jnp.float32),
                        wh.astype(jnp.float32) * lr_mul)
             + (bh.astype(jnp.float32) * lr_mul)[None])
    assert out_h.dtype == jnp.bfloat16
    assert jnp.allclose(out_h.astype(jnp.float32), ref_h, atol=3e-2, rtol=3e-2)

    print("KERNEL_OK")
</pallas_src>

<mosaic_0001>
module attributes {stable_mosaic.version = 11 : i64} {
  func.func @kernel(%arg0: i32, %arg1: i32, %arg2: memref<8x4x8xf32, #tpu.memory_space<vmem>>, %arg3: memref<4x32x8xf32, #tpu.memory_space<vmem>>, %arg4: memref<8x128xf32, #tpu.memory_space<vmem>>) attributes {dimension_semantics = [#tpu.dimension_semantics<arbitrary>, #tpu.dimension_semantics<arbitrary>], iteration_bounds = array<i64: 1, 1>, scalar_prefetch = 0 : i64, scratch_operands = 0 : i64, tpu.core_type = #tpu.core_type<tc>, window_params = [{transform_indices = @transform_0, window_bounds = array<i64: 8, 4, 8>}, {transform_indices = @transform_1, window_bounds = array<i64: 4, 32, 8>}, {transform_indices = @transform_2, window_bounds = array<i64: 8, 128>}]} {
    %c0 = arith.constant 0 : index
    %c0_0 = arith.constant 0 : index
    %c0_1 = arith.constant 0 : index
    %0 = vector.load %arg2[%c0, %c0_0, %c0_1] : memref<8x4x8xf32, #tpu.memory_space<vmem>>, vector<8x4x8xf32>
    %c0_2 = arith.constant 0 : index
    %c0_3 = arith.constant 0 : index
    %c0_4 = arith.constant 0 : index
    %1 = vector.load %arg3[%c0_2, %c0_3, %c0_4] : memref<4x32x8xf32, #tpu.memory_space<vmem>>, vector<4x32x8xf32>
    "tpu.trace_start"() <{level = 10 : i32, message = "bni,noi->bno"}> : () -> ()
    %cst = arith.constant dense<0.000000e+00> : vector<4x32x8xf32>
    %2 = tpu.matmul %1, %0, %cst {dimension_numbers = #tpu.dot_dimension_numbers<[2], [2], [1], [0], [0, 0, 0, 1, 1, 0], [0], [1]>} : vector<4x32x8xf32>, vector<8x4x8xf32>, vector<4x32x8xf32> -> vector<4x32x8xf32>
    %3 = tpu.transpose %2, [2, 0, 1] : vector<4x32x8xf32> -> vector<8x4x32xf32>
    "tpu.trace_stop"() : () -> ()
    %4 = vector.extract_strided_slice %3 {offsets = [0, 0, 0], sizes = [8, 1, 32], strides = [1, 1, 1]} : vector<8x4x32xf32> to vector<8x1x32xf32>
    %5 = vector.shape_cast %4 : vector<8x1x32xf32> to vector<8x32xf32>
    %c0_5 = arith.constant 0 : index
    %c0_6 = arith.constant 0 : index
    %6 = vector.load %arg4[%c0_5, %c0_6] : memref<8x128xf32, #tpu.memory_space<vmem>>, vector<8x32xf32>
    tpu.vector_store %arg4[%c0_5, %c0_6], %5 {strides = array<i32>} : memref<8x128xf32, #tpu.memory_space<vmem>>, vector<8x32xf32>,
    %7 = vector.extract_strided_slice %3 {offsets = [0, 1, 0], sizes = [8, 1, 32], strides = [1, 1, 1]} : vector<8x4x32xf32> to vector<8x1x32xf32>
    %8 = vector.shape_cast %7 : vector<8x1x32xf32> to vector<8x32xf32>
    %c0_7 = arith.constant 0 : index
    %c32 = arith.constant 32 : index
    %9 = vector.load %arg4[%c0_7, %c32] : memref<8x128xf32, #tpu.memory_space<vmem>>, vector<8x32xf32>
    tpu.vector_store %arg4[%c0_7, %c32], %8 {strides = array<i32>} : memref<8x128xf32, #tpu.memory_space<vmem>>, vector<8x32xf32>,
    %10 = vector.extract_strided_slice %3 {offsets = [0, 2, 0], sizes = [8, 1, 32], strides = [1, 1, 1]} : vector<8x4x32xf32> to vector<8x1x32xf32>
    %11 = vector.shape_cast %10 : vector<8x1x32xf32> to vector<8x32xf32>
    %c0_8 = arith.constant 0 : index
    %c64 = arith.constant 64 : index
    %12 = vector.load %arg4[%c0_8, %c64] : memref<8x128xf32, #tpu.memory_space<vmem>>, vector<8x32xf32>
    tpu.vector_store %arg4[%c0_8, %c64], %11 {strides = array<i32>} : memref<8x128xf32, #tpu.memory_space<vmem>>, vector<8x32xf32>,
    %13 = vector.extract_strided_slice %3 {offsets = [0, 3, 0], sizes = [8, 1, 32], strides = [1, 1, 1]} : vector<8x4x32xf32> to vector<8x1x32xf32>
    %14 = vector.shape_cast %13 : vector<8x1x32xf32> to vector<8x32xf32>
    %c0_9 = arith.constant 0 : index
    %c96 = arith.constant 96 : index
    %15 = vector.load %arg4[%c0_9, %c96] : memref<8x128xf32, #tpu.memory_space<vmem>>, vector<8x32xf32>
    tpu.vector_store %arg4[%c0_9, %c96], %14 {strides = array<i32>} : memref<8x128xf32, #tpu.memory_space<vmem>>, vector<8x32xf32>,
    return
  }
  func.func @transform_0(%arg0: i32, %arg1: i32) -> (i32, i32, i32) {
    %c0_i32 = arith.constant 0 : i32
    %c0_i32_0 = arith.constant 0 : i32
    return %arg1, %arg0, %c0_i32 : i32, i32, i32
  }
  func.func @transform_1(%arg0: i32, %arg1: i32) -> (i32, i32, i32) {
    %c0_i32 = arith.constant 0 : i32
    %c0_i32_0 = arith.constant 0 : i32
    %c0_i32_1 = arith.constant 0 : i32
    return %arg0, %c0_i32, %c0_i32_0 : i32, i32, i32
  }
  func.func @transform_2(%arg0: i32, %arg1: i32) -> (i32, i32) {
    %c0_i32 = arith.constant 0 : i32
    return %arg1, %arg0 : i32, i32
  }
}

module attributes {stable_mosaic.version = 11 : i64} {
  func.func @kernel(%arg0: i32, %arg1: i32, %arg2: memref<4x8x32xf32, #tpu.memory_space<vmem>>, %arg3: memref<8x32x32xf32, #tpu.memory_space<vmem>>, %arg4: memref<8x32xf32, #tpu.memory_space<vmem>>, %arg5: memref<4x8x32xf32, #tpu.memory_space<vmem>>) attributes {dimension_semantics = [#tpu.dimension_semantics<parallel>, #tpu.dimension_semantics<parallel>], iteration_bounds = array<i64: 2, 1>, scalar_prefetch = 0 : i64, scratch_operands = 0 : i64, tpu.core_type = #tpu.core_type<tc>, window_params = [{transform_indices = @transform_0, window_bounds = array<i64: 4, 8, 32>}, {transform_indices = @transform_1, window_bounds = array<i64: 8, 32, 32>}, {transform_indices = @transform_2, window_bounds = array<i64: 8, 32>}, {transform_indices = @transform_3, window_bounds = array<i64: 4, 8, 32>}]} {
    %c0 = arith.constant 0 : index
    %c0_0 = arith.constant 0 : index
    %c0_1 = arith.constant 0 : index
    %0 = vector.load %arg2[%c0, %c0_0, %c0_1] : memref<4x8x32xf32, #tpu.memory_space<vmem>>, vector<4x8x32xf32>
    %c0_2 = arith.constant 0 : index
    %c0_3 = arith.constant 0 : index
    %c0_4 = arith.constant 0 : index
    %1 = vector.load %arg3[%c0_2, %c0_3, %c0_4] : memref<8x32x32xf32, #tpu.memory_space<vmem>>, vector<8x32x32xf32>
    "tpu.trace_start"() <{level = 10 : i32, message = "bni,noi->bno"}> : () -> ()
    %cst = arith.constant dense<0.000000e+00> : vector<8x32x4xf32>
    %2 = tpu.matmul %1, %0, %cst {dimension_numbers = #tpu.dot_dimension_numbers<[2], [2], [1], [0], [0, 0, 0, 1, 1, 0], [0], [1]>} : vector<8x32x32xf32>, vector<4x8x32xf32>, vector<8x32x4xf32> -> vector<8x32x4xf32>
    %3 = tpu.transpose %2, [2, 0, 1] : vector<8x32x4xf32> -> vector<4x8x32xf32>
    "tpu.trace_stop"() : () -> ()
    %c0_5 = arith.constant 0 : index
    %c0_6 = arith.constant 0 : index
    %4 = vector.load %arg4[%c0_5, %c0_6] : memref<8x32xf32, #tpu.memory_space<vmem>>, vector<8x32xf32>
    %5 = vector.shape_cast %4 : vector<8x32xf32> to vector<1x8x32xf32>
    %6 = vector.broadcast %5 : vector<1x8x32xf32> to vector<4x8x32xf32>
    %7 = arith.addf %3, %6 : vector<4x8x32xf32>
    %cst_7 = arith.constant 2.000000e+00 : f32
    %8 = vector.broadcast %cst_7 : f32 to vector<4x8x32xf32>
    %9 = arith.mulf %7, %8 : vector<4x8x32xf32>
    %c0_8 = arith.constant 0 : index
    %c0_9 = arith.constant 0 : index
    %c0_10 = arith.constant 0 : index
    %10 = vector.load %arg5[%c0_8, %c0_9, %c0_10] : memref<4x8x32xf32, #tpu.memory_space<vmem>>, vector<4x8x32xf32>
    tpu.vector_store %arg5[%c0_8, %c0_9, %c0_10], %9 {strides = array<i32>} : memref<4x8x32xf32, #tpu.memory_space<vmem>>, vector<4x8x32xf32>,
    return
  }
  func.func @transform_0(%arg0: i32, %arg1: i32) -> (i32, i32, i32) {
    %c0_i32 = arith.constant 0 : i32
    %c0_i32_0 = arith.constant 0 : i32
    return %arg1, %arg0, %c0_i32 : i32, i32, i32
  }
  func.func @transform_1(%arg0: i32, %arg1: i32) -> (i32, i32, i32) {
    %c0_i32 = arith.constant 0 : i32
    %c0_i32_0 = arith.constant 0 : i32
    %c0_i32_1 = arith.constant 0 : i32
    return %arg0, %c0_i32, %c0_i32_0 : i32, i32, i32
  }
  func.func @transform_2(%arg0: i32, %arg1: i32) -> (i32, i32) {
    %c0_i32 = arith.constant 0 : i32
    %c0_i32_0 = arith.constant 0 : i32
    return %arg0, %c0_i32 : i32, i32
  }
  func.func @transform_3(%arg0: i32, %arg1: i32) -> (i32, i32, i32) {
    %c0_i32 = arith.constant 0 : i32
    %c0_i32_0 = arith.constant 0 : i32
    return %arg1, %arg0, %c0_i32 : i32, i32, i32
  }
}

</mosaic_0001>

<bundles_post_ra>
// kernel: tpu_custom_call.1
= control target key start
LH: loop header
LB: loop body
LE: loop exit
PB: predicated region body
PF: predicated region fallthrough
CT: control target
= control target key end

     0   :  { %s1488_s0 = inlined_call_operand.vmem [shape: f32[8,4,8], index: 0, kind: input, shape index: {}]   ;;  %s1489_s1 = inlined_call_operand.vmem [shape: f32[4,32,8], index: 1, kind: input, shape index: {}]   ;;  %s1490_s2 = inlined_call_operand.hbm [shape: f32[8,128], index: 2, kind: output, shape index: {}]  }
   0x1   :  { %v14_v0 = vld [vmem:[%s1488_s0 + $0x8] sm:$0xf]  ;;  %v18_v1 = vld [vmem:[%s1488_s0 + $0x18] sm:$0xf]  ;;  %v12_v2 = vld [vmem:[%s1488_s0] sm:$0xf] }
   0x2   :  { %v1185_v3 = vpack.i.bf16 %v14_v0, %v18_v1  ;;  %v15_v4 = vld [vmem:[%s1488_s0 + $0xc] sm:$0xf] }
   0x3   :  { %v1199_v5 = vpack.i.bf16 %v15_v4, %v12_v2 }
   0x4   :  { %1186 = vxpose.xlu0.b32.start.end [1/1] (short) (narrow) %v1185_v3, 8 }
   0x5   :  { %7 = vsyncpa [#allocation3], 0  ;;  %1200 = vxpose.xlu1.b32.start.end [1/1] (short) (narrow) %v1199_v5, 8  ;;  %v16_v6 = vld [vmem:[%s1488_s0 + $0x10] sm:$0xf]  ;;  %vm293_vm0 = vcmask 1047556  }
   0x6   :  { %v19_v7 = vld [vmem:[%s1488_s0 + $0x1c] sm:$0xf]  ;;  %v13_v8 = vld [vmem:[%s1488_s0 + $0x4] sm:$0xf]  ;;  %v17_v9 = vld [vmem:[%s1488_s0 + $0x14] sm:$0xf] }
   0x7   :  { %v1192_v10 = vpack.i.bf16 %v19_v7, %v16_v6  ;;  %v1206_v11 = vpack.i.bf16 %v13_v8, %v17_v9  ;;  %v1267_v13 = vmov 1983009808   ;;  %v1268_v19 = vmov 1934713408   ;;  %s1270_s27 = smov 64   ;;  %s1271_s28 = smov 96  }
   0x8   :  { %v298_v14 = vunpack.c.l.s4 %v1267_v13  ;;  %v346_v20 = vunpack.c.l.s4 %v1268_v19  ;;  %vm717_vm1 = vcmask 64512   ;;  %vm1081_vm2 = vcmask 1043459   ;;  %s1272_s29 = smov [#allocation2]   ;;  %s1153_s5 = sshll.u32 %s1490_s2, 4  ;;  %s1154_s5 = int_to_ptr.hbm [resolvable:$true] %s1153_s5 }
   0x9   :  { %vm1078_vm3 = vcmask 1042434   ;;  %vm1084_vm4 = vcmask 1044484   ;;  %vm1087_vm5 = vcmask 1045509   ;;  %vm1090_vm6 = vcmask 1046534   ;;  %s1151_s30 = sshll.u32 %s1272_s29, 4  ;;  %s1152_s30 = int_to_ptr.vmem [resolvable:$true] %s1151_s30 }
   0xa   :  { %v1312_v22 = vunpack.c.0.s8 %v298_v14  ;;  %v1315_v26 = vunpack.c.0.s8 %v346_v20  ;;  %vm1075_vm7 = vcmask 1041409   ;;  %vm1093_vm8 = vcmask 1047559  }
   0xb   :  { %vm1096_vm9 = vcmask 261120   ;;  %vm1112_vm10 = vcmask 516352   ;;  %vm1110_vm11 = vcmask 523521   ;;  %vm1126_vm12 = vcmask 785922  }
   0xc   :  { %1193 = vxpose.xlu0.b32.start.end [1/1] (short) (narrow) %v1192_v10, 8  ;;  %vm1128_vm13 = vcmask 779776   ;;  %vm1142_vm14 = vcmask 1048323   ;;  %vm1144_vm15 = vcmask 1043200  }
   0xd   :  { %1207 = vxpose.xlu1.b32.start.end [1/1] (short) (narrow) %v1206_v11, 8 }
  0xa8   :  { %v1187_v12 = vpop.trf.xlu0 }
  0xa9   :  { %v1191_v15 = vunpack.i.h.bf16 %v1187_v12  ;;  %v1201_v16 = vpop.trf.xlu1  ;;  %v1188_v21 = vunpack.i.l.bf16 %v1187_v12 }
  0xaa   :  { %v1202_v17 = vunpack.i.l.bf16 %v1201_v16  ;;  %v1205_v23 = vunpack.i.h.bf16 %v1201_v16 }
  0xab   :  { %v292_v18 = vrot.slane %v1191_v15, 4  ;;  %v317_v27 = vrot.slane %v1188_v21, 4 }
  0xac   :  { %v295_v24 = vrot.slane %v1202_v17, 4  ;;  %v305_v28 = vrot.slane %v1205_v23, 4 }
  0xad   :  { %v294_v25 = vsel %vm293_vm0, %v292_v18, %v1202_v17 }
  0xae   :  { %v296_v29 = vsel %vm293_vm0, %v1191_v15, %v295_v24  ;;  %v300_v30 = vperm.slane %v294_v25, %v1312_v22 }
  0xaf   :  { %v304_v37 = vperm.slane %v296_v29, %v1312_v22 }
  0xb0   :  { %v1194_v31 = vpop.trf.xlu0  ;;  %v343_v48 = vrot.slane %v300_v30, 4 }
  0xb1   :  { %v1198_v32 = vunpack.i.h.bf16 %v1194_v31  ;;  %v1195_v33 = vunpack.i.l.bf16 %v1194_v31  ;;  %v1208_v34 = vpop.trf.xlu1  ;;  %v355_v56 = vrot.slane %v304_v37, 4 }
  0xb2   :  { %v1212_v35 = vunpack.i.h.bf16 %v1208_v34  ;;  %v1209_v36 = vunpack.i.l.bf16 %v1208_v34 }
  0xb3   :  { %v329_v38 = vrot.slane %v1198_v32, 4  ;;  %v318_v39 = vsel %vm293_vm0, %v317_v27, %v1195_v33  ;;  %v319_v40 = vrot.slane %v1195_v33, 4 }
  0xb4   :  { %v324_v41 = vperm.slane %v318_v39, %v1312_v22  ;;  %v307_v42 = vrot.slane %v1212_v35, 4  ;;  %v306_v43 = vsel %vm293_vm0, %v305_v28, %v1212_v35  ;;  %v331_v44 = vrot.slane %v1209_v36, 4 }
  0xb5   :  { %v320_v45 = vsel %vm293_vm0, %v1188_v21, %v319_v40  ;;  %v312_v46 = vperm.slane %v306_v43, %v1312_v22  ;;  %v330_v47 = vsel %vm293_vm0, %v329_v38, %v1209_v36 }
  0xb6   :  { %v308_v49 = vsel %vm293_vm0, %v1205_v23, %v307_v42  ;;  %v332_v50 = vsel %vm293_vm0, %v1198_v32, %v331_v44  ;;  %v336_v51 = vperm.slane %v330_v47, %v1312_v22  ;;  %v328_v52 = vperm.slane %v320_v45, %v1312_v22 }
  0xb7   :  { %v316_v53 = vperm.slane %v308_v49, %v1312_v22  ;;  %v341_v54 = vrot.slane %v312_v46, 4  ;;  %v340_v55 = vperm.slane %v332_v50, %v1312_v22  ;;  %v344_v59 = vsel %vm293_vm0, %v312_v46, %v343_v48 }
  0xb8   :  { %v379_v57 = vrot.slane %v328_v52, 4  ;;  %v365_v58 = vrot.slane %v336_v51, 4  ;;  %v367_v60 = vrot.slane %v324_v41, 4  ;;  %v352_v17 = vperm.slane %v344_v59, %v1315_v26 }
  0xb9   :  { %v353_v61 = vrot.slane %v316_v53, 4  ;;  %v356_v62 = vsel %vm293_vm0, %v316_v53, %v355_v56  ;;  %v377_v63 = vrot.slane %v340_v55, 4  ;;  %v342_v0 = vsel %vm293_vm0, %v341_v54, %v300_v30 }
  0xba   :  { %v364_v1 = vperm.slane %v356_v62, %v1315_v26  ;;  %v380_v2 = vsel %vm293_vm0, %v340_v55, %v379_v57  ;;  %v348_v3 = vperm.slane %v342_v0, %v1315_v26  ;;  %v366_v4 = vsel %vm293_vm0, %v365_v58, %v324_v41 }
  0xbb   :  { %v354_v5 = vsel %vm293_vm0, %v353_v61, %v304_v37  ;;  %v378_v6 = vsel %vm293_vm0, %v377_v63, %v328_v52  ;;  %v388_v7 = vperm.slane %v380_v2, %v1315_v26  ;;  %v372_v8 = vperm.slane %v366_v4, %v1315_v26 }
  0xbc   :  { %v360_v9 = vperm.slane %v354_v5, %v1315_v26  ;;  %v384_v10 = vperm.slane %v378_v6, %v1315_v26  ;;  %v403_v11 = vrot.slane %v364_v1, 4  ;;  %v391_v12 = vrot.slane %v348_v3, 4 }
  0xbd   :  { %v368_v13 = vsel %vm293_vm0, %v336_v51, %v367_v60  ;;  %v389_v14 = vrot.slane %v372_v8, 4  ;;  %v401_v31 = vrot.slane %v388_v7, 4  ;;  %v395_v32 = vrot.slane %v352_v17, 4 }
  0xbe   :  { %v399_v15 = vrot.slane %v360_v9, 4  ;;  %v397_v16 = vrot.slane %v384_v10, 4  ;;  %v376_v18 = vperm.slane %v368_v13, %v1315_v26  ;;  %v404_v20 = vsel %vm293_vm0, %v388_v7, %v403_v11 }
  0xbf   :  { %v392_v21 = vsel %vm293_vm0, %v372_v8, %v391_v12  ;;  %v390_v27 = vsel %vm293_vm0, %v389_v14, %v348_v3  ;;  %v402_v33 = vsel %vm293_vm0, %v401_v31, %v364_v1  ;;  %v23_v31 = vld [vmem:[%s1489_s1 + $0x18] sm:$0xff] }
  0xc0   :  { %v400_v19 = vsel %vm293_vm0, %v384_v10, %v399_v15  ;;  %v398_v23 = vsel %vm293_vm0, %v397_v16, %v360_v9  ;;  %v393_v28 = vrot.slane %v376_v18, 4  ;;  %v396_v34 = vsel %vm293_vm0, %v376_v18, %v395_v32  ;;  %v32_v10 = vld [vmem:[%s1489_s1 + $0x60] sm:$0xff]  ;;  %v27_v32 = vld [vmem:[%s1489_s1 + $0x38] sm:$0xff] }
  0xc1   :  { %v1234_v24 = vpack.i.bf16 %v400_v19, %v404_v20  ;;  %v1227_v25 = vpack.i.bf16 %v398_v23, %v392_v21  ;;  %v1220_v35 = vpack.i.bf16 %v402_v33, %v396_v34  ;;  %v20_v15 = vld [vmem:[%s1489_s1] sm:$0xff]  ;;  %v33_v20 = vld [vmem:[%s1489_s1 + $0x68] sm:$0xff]  ;;  %v31_v33 = vld [vmem:[%s1489_s1 + $0x58] sm:$0xff] }
  0xc2   :  { %v394_v29 = vsel %vm293_vm0, %v393_v28, %v352_v17  ;;  %v24_v16 = vld [vmem:[%s1489_s1 + $0x20] sm:$0xff]  ;;  %v21_v21 = vld [vmem:[%s1489_s1 + $0x8] sm:$0xff]  ;;  %v26_v28 = vld [vmem:[%s1489_s1 + $0x30] sm:$0xff] }
  0xc3   :  { %1235 = vxpose.xlu1.b32.start.end [1/1] (short) (narrow) %v1234_v24, 8  ;;  %1228 = vxpose.xlu0.b32.start.end [1/1] (short) (narrow) %v1227_v25, 8  ;;  %v1213_v30 = vpack.i.bf16 %v390_v27, %v394_v29  ;;  %v28_v19 = vld [vmem:[%s1489_s1 + $0x40] sm:$0xff]  ;;  %v25_v23 = vld [vmem:[%s1489_s1 + $0x28] sm:$0xff]  ;;  %v34_v25 = vld [vmem:[%s1489_s1 + $0x70] sm:$0xff] }
  0xc4   :  { %v29_v24 = vld [vmem:[%s1489_s1 + $0x48] sm:$0xff]  ;;  %v22_v27 = vld [vmem:[%s1489_s1 + $0x10] sm:$0xff] }
  0xc5   :  { %1214 = vxpose.xlu2.b32.start.end [1/1] (short) (narrow) %v1213_v30, 8  ;;  %v30_v29 = vld [vmem:[%s1489_s1 + $0x50] sm:$0xff]  ;;  %v35_v30 = vld [vmem:[%s1489_s1 + $0x78] sm:$0xff]  ;;  %s1269_s1 = smov 32  }
  0xcd   :  { %1221 = vxpose.xlu2.b32.start.end [1/1] (short) (narrow) %v1220_v35, 8 }
 0x15e   :  { %v1215_v36 = vpop.trf.xlu2 }
 0x15f   :  { %v1216_v37 = vunpack.i.l.bf16 %v1215_v36  ;;  %v1219_v38 = vunpack.i.h.bf16 %v1215_v36 }
 0x161   :  { %v661_v39 = vrot.slane %v1216_v37, 4 }
 0x163   :  { %v662_v40 = vsel %vm293_vm0, %v661_v39, %v1219_v38 }
 0x164   :  { %v666_v46 = vperm.slane %v662_v40, %v1312_v22 }
 0x166   :  { %v1222_v41 = vpop.trf.xlu2  ;;  %v687_v60 = vrot.slane %v666_v46, 4 }
 0x167   :  { %v1236_v42 = vpop.trf.xlu1  ;;  %v1226_v43 = vunpack.i.h.bf16 %v1222_v41  ;;  %v1223_v44 = vunpack.i.l.bf16 %v1222_v41  ;;  %v1229_v45 = vpop.trf.xlu0 }
 0x168   :  { %v1237_v47 = vunpack.i.l.bf16 %v1236_v42  ;;  %v1233_v50 = vunpack.i.h.bf16 %v1229_v45  ;;  %v1240_v51 = vunpack.i.h.bf16 %v1236_v42  ;;  %v1230_v53 = vunpack.i.l.bf16 %v1229_v45 }
 0x169   :  { %v673_v48 = vrot.slane %v1226_v43, 4  ;;  %v667_v49 = vrot.slane %v1223_v44, 4 }
 0x16a   :  { %v679_v52 = vrot.slane %v1237_v47, 4 }
 0x16b   :  { %v674_v54 = vsel %vm293_vm0, %v673_v48, %v1233_v50  ;;  %v668_v56 = vsel %vm293_vm0, %v667_v49, %v1230_v53 }
 0x16c   :  { %v680_v55 = vsel %vm293_vm0, %v679_v52, %v1240_v51  ;;  %v678_v57 = vperm.slane %v674_v54, %v1312_v22  ;;  %v672_v58 = vperm.slane %v668_v56, %v1312_v22 }
 0x16d   :  { %v684_v59 = vperm.slane %v680_v55, %v1312_v22 }
 0x16e   :  { %v699_v61 = vrot.slane %v678_v57, 4  ;;  %v688_v62 = vsel %vm293_vm0, %v672_v58, %v687_v60  ;;  %v685_v63 = vrot.slane %v672_v58, 4 }
 0x16f   :  { %v697_v0 = vrot.slane %v684_v59, 4  ;;  %v696_v1 = vperm.slane %v688_v62, %v1315_v26 }
 0x170   :  { %v700_v2 = vsel %vm293_vm0, %v684_v59, %v699_v61  ;;  %v686_v4 = vsel %vm293_vm0, %v685_v63, %v666_v46 }
 0x171   :  { %v708_v3 = vperm.slane %v700_v2, %v1315_v26  ;;  %v698_v5 = vsel %vm293_vm0, %v697_v0, %v678_v57  ;;  %v715_v6 = vrot.slane %v696_v1, 4  ;;  %v692_v7 = vperm.slane %v686_v4, %v1315_v26 }
 0x172   :  { %v704_v8 = vperm.slane %v698_v5, %v1315_v26 }
 0x173   :  { %v713_v9 = vrot.slane %v708_v3, 4  ;;  %v716_v11 = vsel %vm293_vm0, %v708_v3, %v715_v6  ;;  %v711_v12 = vrot.slane %v692_v7, 4 }
 0x174   :  { %v709_v13 = vrot.slane %v704_v8, 4  ;;  %868 = vmatpush.msra.mxu3 %v716_v11 }
 0x175   :  { %v714_v14 = vsel %vm293_vm0, %v713_v9, %v696_v1  ;;  %v712_v17 = vsel %vm293_vm0, %v704_v8, %v711_v12  ;;  %1174 = vmatmul.msk.f32.vlgmr.msra.gmra.mxu3 %vm717_vm1, %v32_v10 }
 0x176   :  { %827 = vmatpush.msra.mxu2 %v714_v14  ;;  %v710_v18 = vsel %vm293_vm0, %v709_v13, %v692_v7  ;;  %786 = vmatpush.msra.mxu1 %v712_v17 }
 0x177   :  { %745 = vmatpush.msra.mxu0 %v710_v18  ;;  %1166 = vmatmul.msk.f32.vlgmr.msra.gmra.mxu1 %vm717_vm1, %v24_v16 }
 0x178   :  { %1162 = vmatmul.msk.f32.vlgmr.msra.gmra.mxu0 %vm717_vm1, %v20_v15  ;;  %1170 = vmatmul.msk.f32.vlgmr.msra.gmra.mxu2 %vm717_vm1, %v28_v19 }
 0x17d   :  { %1175 = vmatmul.msk.f32.gmra.mxu3 %vm717_vm1, %v33_v20 }
 0x17f   :  { %1167 = vmatmul.msk.f32.gmra.mxu1 %vm717_vm1, %v25_v23 }
 0x180   :  { %1163 = vmatmul.msk.f32.gmra.mxu0 %vm717_vm1, %v21_v21  ;;  %1171 = vmatmul.msk.f32.gmra.mxu2 %vm717_vm1, %v29_v24 }
 0x185   :  { %1176 = vmatmul.msk.f32.gmra.mxu3 %vm717_vm1, %v34_v25 }
 0x187   :  { %1168 = vmatmul.msk.f32.gmra.mxu1 %vm717_vm1, %v26_v28 }
 0x188   :  { %1164 = vmatmul.msk.f32.gmra.mxu0 %vm717_vm1, %v22_v27  ;;  %1172 = vmatmul.msk.f32.gmra.mxu2 %vm717_vm1, %v30_v29 }
 0x18d   :  { %1177 = vmatmul.msk.f32.gmra.mxu3 %vm717_vm1, %v35_v30 }
 0x18f   :  { %1169 = vmatmul.msk.f32.gmra.mxu1 %vm717_vm1, %v27_v32 }
 0x190   :  { %1165 = vmatmul.msk.f32.gmra.mxu0 %vm717_vm1, %v23_v31  ;;  %1173 = vmatmul.msk.f32.gmra.mxu2 %vm717_vm1, %v31_v33 }
 0x1f4   :  { %v788_v35 = vpop.f32.mrf.mxu1 }
 0x1f5   :  { %v747_v34 = vpop.f32.mrf.mxu0  ;;  %914 = vxpose.xlu0.b32.start [1/4] (short) (narrow) %v788_v35, 8 }
 0x1f6   :  { %882 = vxpose.xlu2.b32.start [1/4] (short) (narrow) %v747_v34, 8 }
 0x1f8   :  { %v870_v36 = vpop.f32.mrf.mxu3 }
 0x1f9   :  { %978 = vxpose.xlu1.b32.start [1/4] (short) (narrow) %v870_v36, 8 }
 0x1fb   :  { %v829_v43 = vpop.f32.mrf.mxu2 }
 0x1fc   :  { %v791_v38 = vpop.f32.mrf.mxu1 }
 0x1fd   :  { %v750_v37 = vpop.f32.mrf.mxu0  ;;  %915 = vxpose.xlu0.b32.cont [2/4] (short) (narrow) %v791_v38, 8 }
 0x1fe   :  { %883 = vxpose.xlu2.b32.cont [2/4] (short) (narrow) %v750_v37, 8 }
 0x200   :  { %v873_v39 = vpop.f32.mrf.mxu3 }
 0x201   :  { %979 = vxpose.xlu1.b32.cont [2/4] (short) (narrow) %v873_v39, 8 }
 0x203   :  { %v832_v47 = vpop.f32.mrf.mxu2 }
 0x204   :  { %v794_v41 = vpop.f32.mrf.mxu1 }
 0x205   :  { %v753_v40 = vpop.f32.mrf.mxu0  ;;  %916 = vxpose.xlu0.b32.cont [3/4] (short) (narrow) %v794_v41, 8 }
 0x206   :  { %884 = vxpose.xlu2.b32.cont [3/4] (short) (narrow) %v753_v40, 8 }
 0x208   :  { %v876_v42 = vpop.f32.mrf.mxu3 }
 0x209   :  { %980 = vxpose.xlu1.b32.cont [3/4] (short) (narrow) %v876_v42, 8 }
 0x20b   :  { %v835_v48 = vpop.f32.mrf.mxu2 }
 0x20c   :  { %v797_v45 = vpop.f32.mrf.mxu1 }
 0x20d   :  { %v756_v44 = vpop.f32.mrf.mxu0  ;;  %917 = vxpose.xlu0.b32.end [4/4] (short) (narrow) %v797_v45, 8 }
 0x20e   :  { %885 = vxpose.xlu2.b32.end [4/4] (short) (narrow) %v756_v44, 8 }
 0x210   :  { %v879_v46 = vpop.f32.mrf.mxu3 }
 0x211   :  { %981 = vxpose.xlu1.b32.end [4/4] (short) (narrow) %v879_v46, 8 }
 0x213   :  { %v838_v49 = vpop.f32.mrf.mxu2 }
 0x216   :  { %946 = vxpose.xlu2.b32.start [1/4] (short) (narrow) %v829_v43, 8 }
 0x21e   :  { %947 = vxpose.xlu2.b32.cont [2/4] (short) (narrow) %v832_v47, 8 }
 0x226   :  { %948 = vxpose.xlu2.b32.cont [3/4] (short) (narrow) %v835_v48, 8 }
 0x22e   :  { %949 = vxpose.xlu2.b32.end [4/4] (short) (narrow) %v838_v49, 8 }
 0x28f   :  { %v898_v53 = vpop.trf.xlu2 }
 0x290   :  { %v1012_v59 = vrot.slane %v898_v53, 4 }
 0x299   :  { %v930_v50 = vpop.trf.xlu0 }
 0x29a   :  { %v1024_v52 = vrot.slane %v930_v50, 4 }
 0x29d   :  { %v994_v51 = vpop.trf.xlu1 }
 0x29e   :  { %v1022_v54 = vrot.slane %v994_v51, 4  ;;  %v1025_v55 = vsel %vm293_vm0, %v994_v51, %v1024_v52 }
 0x29f   :  { %v1033_v57 = vperm.slane %v1025_v55, %v1312_v22 }
 0x2a0   :  { %v1023_v56 = vsel %vm293_vm0, %v1022_v54, %v930_v50 }
 0x2a1   :  { %v1029_v58 = vperm.slane %v1023_v56, %v1312_v22  ;;  %v1046_v60 = vrot.slane %v1033_v57, 4 }
 0x2a3   :  { %v1034_v0 = vrot.slane %v1029_v58, 4 }
 0x2af   :  { %v962_v61 = vpop.trf.xlu2 }
 0x2b0   :  { %v1010_v62 = vrot.slane %v962_v61, 4  ;;  %v1013_v63 = vsel %vm293_vm0, %v962_v61, %v1012_v59 }
 0x2b1   :  { %v1021_v1 = vperm.slane %v1013_v63, %v1312_v22 }
 0x2b2   :  { %v1011_v2 = vsel %vm293_vm0, %v1010_v62, %v898_v53 }
 0x2b3   :  { %v1017_v3 = vperm.slane %v1011_v2, %v1312_v22  ;;  %v1047_v4 = vsel %vm293_vm0, %v1046_v60, %v1021_v1  ;;  %v1048_v5 = vrot.slane %v1021_v1, 4 }
 0x2b4   :  { %v1053_v6 = vperm.slane %v1047_v4, %v1315_v26 }
 0x2b5   :  { %v1035_v7 = vsel %vm293_vm0, %v1034_v0, %v1017_v3  ;;  %v1036_v8 = vrot.slane %v1017_v3, 4  ;;  %v1049_v9 = vsel %vm293_vm0, %v1033_v57, %v1048_v5 }
 0x2b6   :  { %v1041_v10 = vperm.slane %v1035_v7, %v1315_v26  ;;  %v1057_v11 = vperm.slane %v1049_v9, %v1315_v26  ;;  %v1062_v14 = vrot.slane %v1053_v6, 4 }
 0x2b7   :  { %v1037_v12 = vsel %vm293_vm0, %v1029_v58, %v1036_v8 }
 0x2b8   :  { %v1045_v13 = vperm.slane %v1037_v12, %v1315_v26  ;;  %v1064_v22 = vrot.slane %v1057_v11, 4  ;;  %v1058_v15 = vrot.slane %v1041_v10, 4  ;;  %v1063_v23 = vsel %vm293_vm0, 0.0, %v1062_v14 }
 0x2b9   :  { %v1086_v31 = vrot.slane %v1063_v23, 3  ;;  %v1089_v36 = vrot.slane %v1057_v11, 2 }
 0x2ba   :  { %v1065_v16 = vsel %vm293_vm0, 0.0, %v1064_v22  ;;  %v1059_v17 = vsel %vm293_vm0, 0.0, %v1058_v15  ;;  %v1060_v18 = vrot.slane %v1045_v13, 4  ;;  %v1077_v24 = vrot.slane %v1045_v13, 6 }
 0x2bb   :  { %v1092_v19 = vrot.slane %v1065_v16, 1  ;;  %v1074_v20 = vrot.slane %v1059_v17, 7  ;;  %v1134_v51 = vsel %vm1075_vm7, %v1089_v36, %v1086_v31 }
 0x2bc   :  { %v1061_v21 = vsel %vm293_vm0, 0.0, %v1060_v18 }
 0x2bd   :  { %1106 = vrot.lane.b32.xlu1 %v1092_v19, %s1269_s1  ;;  %v1080_v26 = vrot.slane %v1061_v21, 5  ;;  %v1114_v25 = vsel %vm1081_vm2, %v1074_v20, %v1041_v10  ;;  %v1098_v27 = vsel %vm1078_vm3, %v1074_v20, %v1041_v10  ;;  %v1076_v30 = vsel %vm1075_vm7, %v1074_v20, %v1041_v10 }
 0x2be   :  { %v1115_v28 = vsel %vm1084_vm4, %v1077_v24, %v1114_v25  ;;  %v1099_v29 = vsel %vm1081_vm2, %v1077_v24, %v1098_v27  ;;  %v1079_v34 = vsel %vm1078_vm3, %v1077_v24, %v1076_v30  ;;  %v1130_v43 = vsel %vm1084_vm4, %v1074_v20, %v1041_v10 }
 0x2bf   :  { %v1116_v32 = vsel %vm1087_vm5, %v1080_v26, %v1115_v28  ;;  %v1100_v33 = vsel %vm1084_vm4, %v1080_v26, %v1099_v29  ;;  %v1082_v38 = vsel %vm1081_vm2, %v1080_v26, %v1079_v34  ;;  %v1119_v45 = vsel %vm1075_vm7, %v1092_v19, %v1089_v36 }
 0x2c0   :  { %v1117_v35 = vsel %vm1090_vm6, %v1062_v14, %v1116_v32  ;;  %v1101_v37 = vsel %vm1087_vm5, %v1062_v14, %v1100_v33  ;;  %v1085_v42 = vsel %vm1084_vm4, %v1062_v14, %v1082_v38  ;;  %v1131_v48 = vsel %vm1087_vm5, %v1077_v24, %v1130_v43 }
 0x2c1   :  { %v1118_v39 = vsel %vm1093_vm8, %v1086_v31, %v1117_v35  ;;  %v1102_v40 = vsel %vm1090_vm6, %v1086_v31, %v1101_v37  ;;  %v1088_v44 = vsel %vm1087_vm5, %v1086_v31, %v1085_v42  ;;  %v1132_v49 = vsel %vm1090_vm6, %v1080_v26, %v1131_v48 }
 0x2c2   :  { %1120 = vrot.lane.b32.xlu2 %v1118_v39, %s1270_s27  ;;  %v1103_v41 = vsel %vm1093_vm8, %v1089_v36, %v1102_v40  ;;  %v1091_v46 = vsel %vm1090_vm6, %v1089_v36, %v1088_v44  ;;  %v1133_v50 = vsel %vm1093_vm8, %v1062_v14, %v1132_v49  ;;  %v1135_v52 = vsel %vm1078_vm3, %v1092_v19, %v1134_v51 }
 0x2c3   :  { %1104 = vrot.lane.b32.xlu0 %v1103_v41, %s1269_s1  ;;  %v1094_v47 = vsel %vm1093_vm8, %v1092_v19, %v1091_v46 }
 0x2c4   :  { %1097 = vst.msk [vmem:[#allocation2] sm:$0xff] %vm1096_vm9, %v1094_v47 }
 0x2c5   :  { %1122 = vrot.lane.b32.xlu1 %v1119_v45, %s1270_s27 }
 0x2cd   :  { %1136 = vrot.lane.b32.xlu1 %v1133_v50, %s1271_s28 }
 0x2d5   :  { %1138 = vrot.lane.b32.xlu1 %v1135_v52, %s1271_s28 }
 0x31c   :  { %v1121_v55 = vpop.permute.xlu2 %1120 }
 0x32f   :  { %v1107_v53 = vpop.permute.xlu1 %1106 }
 0x330   :  { %1113 = vst.msk [vmem:[#allocation2 + $0x7] sm:$0x1] %vm1112_vm10, %v1107_v53 }
 0x335   :  { %v1105_v54 = vpop.permute.xlu0 %1104 }
 0x336   :  { %1111 = vst.msk [vmem:[#allocation2 - $0x1] sm:$0xfe] %vm1110_vm11, %v1105_v54 }
 0x337   :  { %v1123_v56 = vpop.permute.xlu1 %1122  ;;  %1127 = vst.msk [vmem:[#allocation2 - $0x2] sm:$0xfc] %vm1126_vm12, %v1121_v55 }
 0x338   :  { %1129 = vst.msk [vmem:[#allocation2 + $0x6] sm:$0x3] %vm1128_vm13, %v1123_v56 }
 0x33f   :  { %v1137_v57 = vpop.permute.xlu1 %1136 }
 0x340   :  { %1143 = vst.msk [vmem:[#allocation2 - $0x3] sm:$0xf8] %vm1142_vm14, %v1137_v57 }
 0x347   :  { %v1139_v58 = vpop.permute.xlu1 %1138 }
 0x348   :  { %1145 = vst.msk [vmem:[#allocation2 + $0x5] sm:$0x7] %vm1144_vm15, %v1139_v58 }
 0x349   :  { %1156 = dma.vmem_to_hbm [thread:$0]  %s1152_s30, 128, %s1154_s5, [#allocation3]  }
 0x34a   :  { %1265 = dma.done.wait [#allocation3], 128  }
 0x34b   :  { %1266 = vsyncadd [#allocation3], 4294967168 }
 0x34c   :  { %1161 = vsyncpa [#allocation3], 1 }

// kernel: tpu_custom_call.1
= control target key start
LH: loop header
LB: loop body
LE: loop exit
PB: predicated region body
PF: predicated region fallthrough
CT: control target
= control target key end

     0   :  { %s4159_s0 = inlined_call_operand.hbm [shape: f32[4,16,32], index: 0, kind: input, shape index: {}]   ;;  %s4160_s1 = inlined_call_operand.hbm [shape: f32[16,32,32], index: 1, kind: input, shape index: {}]   ;;  %s4161_s2 = inlined_call_operand.hbm [shape: f32[16,32], index: 2, kind: input, shape index: {}]   ;;  %s4162_s3 = inlined_call_operand.hbm [shape: f32[4,16,32], index: 3, kind: output, shape index: {}]  }
   0x1   :  { %4170 = sst [smem:[#allocation19_spill]] %s4160_s1 }
   0x2   :  { %8 = vsyncpa [#allocation3], 0 }
   0x3   :  { %10 = vsyncpa [#allocation3 + $0x1], 0 }
   0x4   :  { %11 = vsyncpa [#allocation6], 0 }
   0x5   :  { %13 = vsyncpa [#allocation6 + $0x1], 0 }
   0x6   :  { %14 = vsyncpa [#allocation4], 0 }
   0x7   :  { %16 = vsyncpa [#allocation4 + $0x1], 0  ;;  %s3450_s12 = smov 0   ;;  %s3452_s13 = smov 0  }
   0x8   :  { %s3454_s14 = smov 0   ;;  %s3456_s15 = smov 0  }
   0x9   :  { %s3458_s16 = smov 0   ;;  %s3460_s17 = smov 0  }
   0xa LB: > { %4171 = sst [smem:[#allocation12_spill]] %s3400_s12  ;;  %s3481_s18 = sadd.s32 4294967295, %s3420_s17   ;;  %s3420_s17 = sphi %s3460_s17, %s22_s17   ;;  %s3416_s16 = sphi %s3458_s16, %s4192_s16   ;;  %s3412_s15 = sphi %s3456_s15, %s4191_s15   ;;  %s3408_s14 = sphi %s3454_s14, %s4190_s14   ;;  %s3404_s13 = sphi %s3452_s13, %s4194_s13   ;;  %s3400_s12 = sphi %s3450_s12, %s4193_s12  }
   0xb   : > { %4172 = sst [smem:[#allocation13_spill]] %s3408_s14  ;;  %s2953_s19 = sadd.s32 4294967294, %s3420_s17  }
   0xc   : > { %4173 = sst [smem:[#allocation14_spill]] %s3416_s16  ;;  %s34_s20 = sadd.s32 1, %s3416_s16 }
   0xd   : > { %4174 = sst [smem:[#allocation15_spill]] %s3420_s17  ;;  %s43_s21 = sadd.s32 1, %s3408_s14 }
   0xe   : > { %p36_p0 = scmp.ge.s32.totalorder %s34_s20, 2  ;;  %p50_p1 = scmp.ne.s32.totalorder %s3408_s14, %s3404_s13 }
   0xf   : > { %p51_p2 = scmp.eq.s32.totalorder %s3420_s17, 0  ;;  %p56_p3 = scmp.ne.s32.totalorder %s3404_s13, %s3400_s12 }
  0x10   : > { %s4196_s20 = smov (%p36_p0, %s34_s20), 0  ;;  %p57_p5 = scmp.eq.s32.totalorder %s3481_s18, 0 }
  0x11   : > { %4175 = sst [smem:[#allocation16_spill]] %s4196_s20  ;;  %p3493_p4 = por %p51_p2, %p50_p1 }
  0x12   : > { %s39_s23 = ssub.s32 %s3416_s16, %s4196_s20  ;;  %p134_p6 = scmp.eq.s32.totalorder %s3481_s18, 1 }
  0x13   : > { %p41_p7 = scmp.eq.s32.totalorder %s39_s23, 0  ;;  %p3501_p8 = por %p57_p5, %p56_p3 }
  0x14   : > { %p3505_p9 = por %p134_p6, %p50_p1  ;;  %p140_p10 = scmp.eq.s32.totalorder %s2953_s19, 1 }
  0x15   : > { %s3510_s26 = scalar_select %p41_p7, %s3408_s14, %s43_s21  }
  0x16   : > { %p3512_p11 = por %p140_p10, %p56_p3  ;;  %p2955_p12 = scmp.ge.s32.totalorder %s3420_s17, 2 }
  0x17   : > { %4179 = sst [smem:[#allocation17_spill]] %s3510_s26  ;;  %p3029_p13 = scmp.lt.s32.totalorder %s3420_s17, 2 }
  0x18   : > { %s4180_s27 = scalar_select %p3512_p11, 1, 0 }
  0x19   : > { %s3519_s28 = sand.u32 1, %s3408_s14   ;;  %p3523_p0 = pnand %p3029_p13, %p3493_p4 }
  0x1a   : > { %4181 = sst [smem:[#allocation18_spill]] %s4180_s27  ;;  %s184_s30 = sand.u32 1, %s3420_s17  }
  0x1b   : > { %s2958_s4 = sshll.u32 %s3519_s28, 8  ;;  %s3006_s5 = sshll.u32 %s3416_s16, 8 }
  0x1c   : > { %s188_s6 = scalar_lea.vmem [#allocation5], %s2958_s4  ;;  %s4183_s1 = sld [smem:[#allocation19_spill]] }
  0x1d   : > { %s197_s7 = sshll.u32 %s188_s6, 4  ;;  %p2964_p1 = scmp.ge.s32.totalorder %s3420_s17, 1  ;;  %s198_s7 = int_to_ptr.vmem [resolvable:$true] %s197_s7 }
  0x1e   : > { %p224_p2 = scmp.lt.s32.totalorder %s3420_s17, 3  ;;  %s185_s19 = scalar_lea.sflag [#allocation6], %s184_s30 }
  0x1f   : > { %s3422_s21 = smov 128   ;;  %s3423_s22 = smov 8  }
  0x20   : > { %p3537_p3 = pnand %p2964_p1, %p224_p2  ;;  %s2956_s4 = sshll.u32 %s3519_s28, 5 }
  0x21   : > { %s2957_s6 = sshll.u32 %s3416_s16, 3  ;;  %s2962_s30 = sshll.u32 %s3519_s28, 3 }
  0x22   : > { %s194_s10 = scalar_lea.hbm %s4183_s1, %s3006_s5  ;;  %s171_s9 = scalar_lea.hbm %s4159_s0, %s2957_s6 }
  0x23   : > { %s195_s11 = sshll.u32 %s194_s10, 4  ;;  %s172_s10 = sshll.u32 %s171_s9, 4  ;;  %s196_s11 = int_to_ptr.hbm [resolvable:$true] %s195_s11  ;;  %s173_s10 = int_to_ptr.hbm [resolvable:$true] %s172_s10 }
  0x24   : > { %3021 = dma.hbm_to_vmem [thread:$0]  (!%p3523_p0), %s196_s11, 4096, %s198_s7, %s185_s19, %s3422_s21, %s3422_s21, %s3423_s22  }
  0x25   : > { %s164_s1 = scalar_lea.vmem [#allocation2], %s2956_s4  ;;  %s161_s26 = scalar_lea.sflag [#allocation3], %s3519_s28 }
  0x26   : > { %s174_s20 = sshll.u32 %s164_s1, 4  ;;  %s3424_s14 = smov 256   ;;  %s175_s20 = int_to_ptr.vmem [resolvable:$true] %s174_s20 }
  0x27   : > { %3018 = dma.hbm_to_vmem [thread:$0]  (!%p3523_p0), %s173_s10, 512, %s175_s20, %s161_s26, %s3424_s14, %s3422_s21, %s3423_s22  }
  0x28   : > { %s215_s17 = scalar_lea.hbm %s4161_s2, %s2957_s6  ;;  %s211_s27 = scalar_lea.vmem [#allocation7], %s2962_s30 }
  0x29   : > { %s217_s16 = sshll.u32 %s215_s17, 4  ;;  %s219_s12 = sshll.u32 %s211_s27, 4  ;;  %s218_s16 = int_to_ptr.hbm [resolvable:$true] %s217_s16  ;;  %s220_s12 = int_to_ptr.vmem [resolvable:$true] %s219_s12 }
  0x2a   : > { %3024 = dma.hbm_to_vmem [thread:$0]  (!%p3523_p0), %s218_s16, 128, %s220_s12, %s185_s19  }
  0x2b   : > { %228 = sbr.rel (%p3537_p3) target bundleno = 885 (0x375), region = 32  ;;  %s3558_s1 = sand.u32 (!%p3537_p3), 1, %s3404_s13  }
  0x2c   : > { %s2965_s14 = sshll.u32 (!%p3537_p3), %s3558_s1, 5  ;;  %s231_s20 = scalar_lea.sflag (!%p3537_p3), [#allocation3], %s3558_s1 }
  0x2d   : > { %s234_s17 = scalar_lea.vmem (!%p3537_p3), [#allocation2], %s2965_s14 }
  0x30   : > { %3387 = dma.done.wait (%p3501_p8), %s231_s20, 512  }
  0x31   : > { %3389 = vsyncadd (%p3501_p8), %s231_s20, 4294966784  ;;  %s240_s12 = sand.u32 1, %s3481_s18   ;;  %s2966_s16 = sshll.u32 %s3558_s1, 8 }
  0x32   : > { %s241_s26 = scalar_lea.sflag [#allocation6], %s240_s12  ;;  %s3570_s27 = scalar_lea.vmem [#allocation5], %s2966_s16 }
  0x33   : > { %3391 = dma.done.wait (%p3501_p8), %s241_s26, 4224  }
  0x34   : > { %3393 = vsyncadd (%p3501_p8), %s241_s26, 4294963072  ;;  %v291_v0 = vld [vmem:[%s234_s17] sm:$0xff]  ;;  %v293_v1 = vld [vmem:[%s234_s17 + $0x10] sm:$0xff]  ;;  %v3425_v12 = vmov 1983009808   ;;  %vm456_vm0 = vcmask 1047556  }
  0x35   : > { %v3088_v2 = vpack.i.bf16 %v293_v1, %v291_v0  ;;  %v292_v3 = vld [vmem:[%s234_s17 + $0x8] sm:$0xff]  ;;  %v294_v4 = vld [vmem:[%s234_s17 + $0x18] sm:$0xff]  ;;  %v461_v13 = vunpack.c.l.s4 %v3425_v12  ;;  %v3426_v23 = vmov 1934713408   ;;  %vm2152_vm1 = vcmask 261120   ;;  %s2967_s18 = sshll.u32 %s3558_s1, 3 }
  0x36   : > { %v3110_v5 = vpack.i.bf16 %v294_v4, %v292_v3  ;;  %v485_v24 = vunpack.c.l.s4 %v3426_v23  ;;  %s3002_s24 = sshll.u32 %s3412_s15, 3  ;;  %s254_s28 = scalar_lea.vmem [#allocation7], %s2967_s18 }
  0x37   : > { %3089 = vxpose.xlu0.b32.start.end [1/1] (short) (narrow) %v3088_v2, 32  ;;  %v3578_v16 = vunpack.c.0.s8 %v461_v13  ;;  %s2820_s21 = scalar_lea.hbm %s4162_s3, %s3002_s24  ;;  %s287_s15 = scalar_lea.vmem [#allocation8], %s2965_s14 }
  0x38   : > { %v3590_v37 = vunpack.c.0.s8 %v485_v24  ;;  %s2821_s22 = sshll.u32 %s287_s15, 4  ;;  %s2823_s23 = sshll.u32 %s2820_s21, 4  ;;  %s2822_s22 = int_to_ptr.vmem [resolvable:$true] %s2821_s22  ;;  %s2824_s23 = int_to_ptr.hbm [resolvable:$true] %s2823_s23 }
  0x39   : > { %s2807_s4 = scalar_lea.sflag [#allocation4], %s3558_s1  ;;  %s3348_s6 = sshra.s32 %s2824_s23, 4  ;;  %s3349_s6 = int_to_ptr.hbm [resolvable:$true] %s3348_s6 }
  0x3a   : > { %s3350_s5 = scalar_lea.hbm %s3349_s6, 32  ;;  %s3354_s10 = scalar_lea.hbm %s4162_s3, 64 }
  0x3b   : > { %p3351_p4 = scmp.ne.s32.totalorder %s3349_s6, %s3350_s5  ;;  %p3355_p7 = scmp.lt.s32.totalorder %s3349_s6, %s4162_s3 }
  0x3c   : > { %p3356_p8 = scmp.lt.s32.totalorder %s3354_s10, %s3350_s5 }
  0x3d   : > { %p3352_p5 = pnand %p3351_p4, %p3505_p9 }
  0x3e   : > { %p3357_p10 = por %p3356_p8, %p3355_p7 }
  0x3f   : > { %p3353_p6 = pneg %p3352_p5 }
  0x41   : > { %p3358_p13 = pnand %p3357_p10, %p3353_p6 }
  0x57   : > { %3111 = vxpose.xlu0.b32.start.end [1/1] (short) (narrow) %v3110_v5, 32 }
  0xdb   : > { %v3090_v6 = vpop.trf.xlu0 }
  0xdc   : > { %v3094_v9 = vunpack.i.h.bf16 %v3090_v6  ;;  %v3091_v10 = vunpack.i.l.bf16 %v3090_v6 }
  0xde   : > { %v455_v14 = vrot.slane %v3094_v9, 4  ;;  %v458_v15 = vrot.slane %v3091_v10, 4 }
  0xe0   : > { %v457_v17 = vsel %vm456_vm0, %v455_v14, %v3091_v10  ;;  %v459_v18 = vsel %vm456_vm0, %v3094_v9, %v458_v15 }
  0xe1   : > { %v3583_v27 = vperm.slane %v457_v17, %v3578_v16  ;;  %v3586_v28 = vperm.slane %v459_v18, %v3578_v16 }
  0xe3   : > { %v3095_v7 = vpop.trf.xlu0  ;;  %v482_v40 = vrot.slane %v3583_v27, 4  ;;  %v494_v41 = vrot.slane %v3586_v28, 4 }
  0xe4   : > { %v3099_v19 = vunpack.i.h.bf16 %v3095_v7  ;;  %v3096_v20 = vunpack.i.l.bf16 %v3095_v7 }
  0xe6   : > { %v512_v29 = vrot.slane %v3099_v19, 4  ;;  %v514_v30 = vrot.slane %v3096_v20, 4 }
  0xe8   : > { %v513_v42 = vsel %vm456_vm0, %v512_v29, %v3096_v20  ;;  %v515_v43 = vsel %vm456_vm0, %v3099_v19, %v514_v30 }
  0xe9   : > { %v519_v53 = vperm.slane %v513_v42, %v3578_v16  ;;  %v523_v54 = vperm.slane %v515_v43, %v3578_v16 }
  0xeb   : > { %v3100_v8 = vpop.trf.xlu0  ;;  %v538_v1 = vrot.slane %v519_v53, 4  ;;  %v550_v2 = vrot.slane %v523_v54, 4 }
  0xec   : > { %v3104_v21 = vunpack.i.h.bf16 %v3100_v8  ;;  %v3101_v34 = vunpack.i.l.bf16 %v3100_v8 }
  0xee   : > { %v568_v33 = vrot.slane %v3104_v21, 4  ;;  %v570_v45 = vrot.slane %v3101_v34, 4 }
  0xf0   : > { %v569_v44 = vsel %vm456_vm0, %v568_v33, %v3101_v34  ;;  %v571_v59 = vsel %vm456_vm0, %v3104_v21, %v570_v45 }
  0xf1   : > { %v3617_v58 = vperm.slane %v569_v44, %v3578_v16  ;;  %v579_v4 = vperm.slane %v571_v59, %v3578_v16 }
  0xf3   : > { %v3576_v11 = vpop.trf.xlu0  ;;  %v594_v5 = vrot.slane %v3617_v58, 4 }
  0xf4   : > { %v3109_v55 = vunpack.i.h.bf16 %v3576_v11  ;;  %v3106_v29 = vunpack.i.l.bf16 %v3576_v11 }
  0xf6   : > { %v624_v3 = vrot.slane %v3109_v55, 4  ;;  %v626_v59 = vrot.slane %v3106_v29, 4 }
  0xfb   : > { %v3112_v22 = vpop.trf.xlu0 }
  0xfc   : > { %v3116_v25 = vunpack.i.h.bf16 %v3112_v22  ;;  %v3113_v26 = vunpack.i.l.bf16 %v3112_v22 }
  0xfe   : > { %v468_v31 = vrot.slane %v3116_v25, 4  ;;  %v470_v32 = vrot.slane %v3113_v26, 4 }
 0x100   : > { %v469_v35 = vsel %vm456_vm0, %v468_v31, %v3113_v26  ;;  %v471_v36 = vsel %vm456_vm0, %v3116_v25, %v470_v32  ;;  %v606_v32 = vrot.slane %v579_v4, 4 }
 0x101   : > { %v3593_v38 = vperm.slane %v469_v35, %v3578_v16  ;;  %v3596_v39 = vperm.slane %v471_v36, %v3578_v16 }
 0x103   : > { %v3117_v46 = vpop.trf.xlu0  ;;  %v483_v47 = vsel %vm456_vm0, %v3593_v38, %v482_v40  ;;  %v495_v48 = vsel %vm456_vm0, %v3596_v39, %v494_v41  ;;  %v480_v26 = vrot.slane %v3593_v38, 4  ;;  %v625_v41 = vsel %vm456_vm0, %v624_v3, %v3106_v29 }
 0x104   : > { %v3121_v49 = vunpack.i.h.bf16 %v3117_v46  ;;  %v3118_v50 = vunpack.i.l.bf16 %v3117_v46  ;;  %v3608_v51 = vperm.slane %v483_v47, %v3590_v37  ;;  %v3611_v52 = vperm.slane %v495_v48, %v3590_v37 }
 0x105   : > { %v481_v46 = vsel %vm456_vm0, %v480_v26, %v3583_v27 }
 0x106   : > { %v524_v56 = vrot.slane %v3121_v49, 4  ;;  %v526_v57 = vrot.slane %v3118_v50, 4  ;;  %v3132_v60 = vpack.i.bf16 %v3611_v52, %v3608_v51  ;;  %v506_v42 = vrot.slane %v3608_v51, 4 }
 0x107   : > { %v3661_v51 = vperm.slane %v481_v46, %v3590_v37 }
 0x108   : > { %v525_v61 = vsel %vm456_vm0, %v524_v56, %v3118_v50  ;;  %v527_v62 = vsel %vm456_vm0, %v3121_v49, %v526_v57  ;;  %3133 = vxpose.xlu1.b32.start.end [1/1] (short) (narrow) %v3132_v60, 8  ;;  %v631_v57 = vperm.slane %v625_v41, %v3578_v16  ;;  %v507_v27 = vsel %vm456_vm0, 0.0, %v506_v42 }
 0x109   : > { %v531_v63 = vperm.slane %v525_v61, %v3578_v16  ;;  %v535_v0 = vperm.slane %v527_v62, %v3578_v16  ;;  %v3160_v3 = vpack.i.bf16 %v507_v27, %v3661_v51 }
 0x10b   : > { %v3122_v6 = vpop.trf.xlu0  ;;  %v539_v7 = vsel %vm456_vm0, %v531_v63, %v538_v1  ;;  %v551_v8 = vsel %vm456_vm0, %v535_v0, %v550_v2  ;;  %v548_v9 = vrot.slane %v535_v0, 4  ;;  %v536_v10 = vrot.slane %v531_v63, 4 }
 0x10c   : > { %v3126_v12 = vunpack.i.h.bf16 %v3122_v6  ;;  %v3123_v13 = vunpack.i.l.bf16 %v3122_v6  ;;  %v547_v14 = vperm.slane %v539_v7, %v3590_v37  ;;  %v559_v15 = vperm.slane %v551_v8, %v3590_v37 }
 0x10d   : > { %v549_v17 = vsel %vm456_vm0, %v548_v9, %v523_v54  ;;  %v537_v18 = vsel %vm456_vm0, %v536_v10, %v519_v53  ;;  %v627_v6 = vsel %vm456_vm0, %v3109_v55, %v626_v59 }
 0x10e   : > { %v580_v19 = vrot.slane %v3126_v12, 4  ;;  %v582_v20 = vrot.slane %v3123_v13, 4  ;;  %v3637_v21 = vperm.slane %v549_v17, %v3590_v37  ;;  %v3640_v22 = vperm.slane %v537_v18, %v3590_v37 }
 0x10f   : > { %v3139_v23 = vpack.i.bf16 %v559_v15, %v547_v14  ;;  %v566_v24 = vrot.slane %v559_v15, 4  ;;  %v562_v25 = vrot.slane %v547_v14, 4 }
 0x110   : > { %v581_v30 = vsel %vm456_vm0, %v580_v19, %v3123_v13  ;;  %v583_v31 = vsel %vm456_vm0, %v3126_v12, %v582_v20  ;;  %v635_v12 = vperm.slane %v627_v6, %v3578_v16  ;;  %v564_v59 = vrot.slane %v3637_v21, 4 }
 0x111   : > { %3140 = vxpose.xlu1.b32.start.end [1/1] (short) (narrow) %v3139_v23, 8  ;;  %v567_v33 = vsel %vm456_vm0, 0.0, %v566_v24  ;;  %v563_v34 = vsel %vm456_vm0, 0.0, %v562_v25  ;;  %v587_v35 = vperm.slane %v581_v30, %v3578_v16  ;;  %v591_v36 = vperm.slane %v583_v31, %v3578_v16 }
 0x112   : > { %v3153_v40 = vpack.i.bf16 %v567_v33, %v3637_v21  ;;  %v3146_v38 = vpack.i.bf16 %v563_v34, %v3640_v22  ;;  %v662_v20 = vrot.slane %v635_v12, 4 }
 0x113   : > { %v3127_v43 = vpop.trf.xlu0  ;;  %v595_v44 = vsel %vm456_vm0, %v587_v35, %v594_v5  ;;  %v607_v45 = vsel %vm456_vm0, %v591_v36, %v606_v32  ;;  %v604_v48 = vrot.slane %v591_v36, 4  ;;  %v592_v54 = vrot.slane %v587_v35, 4 }
 0x114   : > { %v3131_v47 = vunpack.i.h.bf16 %v3127_v43  ;;  %3154 = vxpose.xlu0.b32.start.end [1/1] (short) (narrow) %v3153_v40, 8  ;;  %3147 = vxpose.xlu2.b32.start.end [1/1] (short) (narrow) %v3146_v38, 8  ;;  %v3128_v49 = vunpack.i.l.bf16 %v3127_v43  ;;  %v603_v50 = vperm.slane %v595_v44, %v3590_v37  ;;  %v615_v53 = vperm.slane %v607_v45, %v3590_v37 }
 0x115   : > { %v605_v62 = vsel %vm456_vm0, %v604_v48, %v579_v4  ;;  %v593_v1 = vsel %vm456_vm0, %v592_v54, %v3617_v58  ;;  %v650_v5 = vrot.slane %v631_v57, 4  ;;  %v492_v38 = vrot.slane %v3596_v39, 4 }
 0x116   : > { %v636_v56 = vrot.slane %v3131_v47, 4  ;;  %v3167_v60 = vpack.i.bf16 %v615_v53, %v603_v50  ;;  %v622_v63 = vrot.slane %v615_v53, 4  ;;  %v638_v0 = vrot.slane %v3128_v49, 4 }
 0x117   : > { %v611_v7 = vperm.slane %v605_v62, %v3590_v37  ;;  %v618_v8 = vrot.slane %v603_v50, 4  ;;  %v599_v9 = vperm.slane %v593_v1, %v3590_v37  ;;  %v510_v44 = vrot.slane %v3611_v52, 4 }
 0x118   : > { %v637_v61 = vsel %vm456_vm0, %v636_v56, %v3128_v49  ;;  %v623_v4 = vsel %vm456_vm0, 0.0, %v622_v63  ;;  %v639_v58 = vsel %vm456_vm0, %v3131_v47, %v638_v0  ;;  %v493_v45 = vsel %vm456_vm0, %v492_v38, %v3586_v28 }
 0x119   : > { %3168 = vxpose.xlu1.b32.start.end [1/1] (short) (narrow) %v3167_v60, 8  ;;  %v643_v2 = vperm.slane %v637_v61, %v3578_v16  ;;  %v3181_v13 = vpack.i.bf16 %v623_v4, %v611_v7  ;;  %v619_v14 = vsel %vm456_vm0, 0.0, %v618_v8  ;;  %v616_v15 = vrot.slane %v599_v9, 4 }
 0x11a   : > { %v620_v17 = vrot.slane %v611_v7, 4  ;;  %v647_v18 = vperm.slane %v639_v58, %v3578_v16  ;;  %v3174_v19 = vpack.i.bf16 %v619_v14, %v599_v9  ;;  %v499_v47 = vperm.slane %v493_v45, %v3590_v37 }
 0x11b   : > { %v651_v10 = vsel %vm456_vm0, %v643_v2, %v650_v5  ;;  %v648_v11 = vrot.slane %v643_v2, 4  ;;  %v617_v25 = vsel %vm456_vm0, 0.0, %v616_v15  ;;  %v511_v50 = vsel %vm456_vm0, 0.0, %v510_v44 }
 0x11c   : > { %3161 = vxpose.xlu2.b32.start.end [1/1] (short) (narrow) %v3160_v3, 8  ;;  %v659_v55 = vperm.slane %v651_v10, %v3590_v37  ;;  %v621_v26 = vsel %vm456_vm0, 0.0, %v620_v17  ;;  %v663_v29 = vsel %vm456_vm0, %v647_v18, %v662_v20  ;;  %v660_v34 = vrot.slane %v647_v18, 4 }
 0x11d   : > { %v649_v23 = vsel %vm456_vm0, %v648_v11, %v631_v57  ;;  %v3188_v31 = vpack.i.bf16 %v621_v26, %v617_v25  ;;  %v671_v33 = vperm.slane %v663_v29, %v3590_v37  ;;  %v3202_v39 = vpack.i.bf16 %v511_v50, %v499_v47 }
 0x11e   : > { %v674_v24 = vrot.slane %v659_v55, 4  ;;  %v655_v30 = vperm.slane %v649_v23, %v3590_v37  ;;  %v661_v36 = vsel %vm456_vm0, %v660_v34, %v635_v12  ;;  %v504_v56 = vrot.slane %v3661_v51, 4 }
 0x11f   : > { %v678_v40 = vrot.slane %v671_v33, 4  ;;  %v667_v41 = vperm.slane %v661_v36, %v3590_v37  ;;  %v3195_v42 = vpack.i.bf16 %v671_v33, %v659_v55  ;;  %v508_v52 = vrot.slane %v499_v47, 4 }
 0x120   : > { %v675_v32 = vsel %vm456_vm0, 0.0, %v674_v24  ;;  %v672_v48 = vrot.slane %v655_v30, 4  ;;  %v560_v28 = vrot.slane %v3640_v22, 4  ;;  %v505_v60 = vsel %vm456_vm0, 0.0, %v504_v56 }
 0x121   : > { %3182 = vxpose.xlu1.b32.start.end [1/1] (short) (narrow) %v3181_v13, 8  ;;  %v3209_v35 = vpack.i.bf16 %v675_v32, %v655_v30  ;;  %v679_v43 = vsel %vm456_vm0, 0.0, %v678_v40  ;;  %v676_v49 = vrot.slane %v667_v41, 4  ;;  %v509_v27 = vsel %vm456_vm0, 0.0, %v508_v52 }
 0x122   : > { %v3216_v46 = vpack.i.bf16 %v679_v43, %v667_v41  ;;  %v673_v53 = vsel %vm456_vm0, 0.0, %v672_v48  ;;  %v3237_v61 = vpack.i.bf16 %v509_v27, %v505_v60  ;;  %v561_v62 = vsel %vm456_vm0, 0.0, %v560_v28 }
 0x123   : > { %v677_v54 = vsel %vm456_vm0, 0.0, %v676_v49  ;;  %v565_v63 = vsel %vm456_vm0, 0.0, %v564_v59 }
 0x124   : > { %3175 = vxpose.xlu2.b32.start.end [1/1] (short) (narrow) %v3174_v19, 8  ;;  %v3223_v57 = vpack.i.bf16 %v677_v54, %v673_v53  ;;  %v3230_v0 = vpack.i.bf16 %v565_v63, %v561_v62 }
 0x129   : > { %3189 = vxpose.xlu1.b32.start.end [1/1] (short) (narrow) %v3188_v31, 8 }
 0x12c   : > { %3210 = vxpose.xlu2.b32.start.end [1/1] (short) (narrow) %v3209_v35, 8 }
 0x131   : > { %3196 = vxpose.xlu1.b32.start.end [1/1] (short) (narrow) %v3195_v42, 8 }
 0x134   : > { %3217 = vxpose.xlu2.b32.start.end [1/1] (short) (narrow) %v3216_v46, 8 }
 0x139   : > { %3203 = vxpose.xlu1.b32.start.end [1/1] (short) (narrow) %v3202_v39, 8 }
 0x13c   : > { %3224 = vxpose.xlu2.b32.start.end [1/1] (short) (narrow) %v3223_v57, 8 }
 0x141   : > { %3238 = vxpose.xlu1.b32.start.end [1/1] (short) (narrow) %v3237_v61, 8 }
 0x144   : > { %3231 = vxpose.xlu2.b32.start.end [1/1] (short) (narrow) %v3230_v0, 8 }
 0x1ac   : > { %v3710_v1 = vpop.trf.xlu1 }
 0x1ad   : > { %v3708_v51 = vpop.trf.xlu2  ;;  %v3135_v7 = vunpack.i.l.bf16 %v3710_v1  ;;  %v3138_v11 = vunpack.i.h.bf16 %v3710_v1 }
 0x1ae   : > { %v3149_v21 = vunpack.i.l.bf16 %v3708_v51  ;;  %v3152_v9 = vunpack.i.h.bf16 %v3708_v51 }
 0x1af   : > { %v1704_v55 = vrot.slane %v3135_v7, 4  ;;  %v3736_v31 = vrot.slane %v3138_v11, 4 }
 0x1b0   : > { %v1818_v8 = vrot.slane %v3149_v21, 4  ;;  %v3732_v30 = vrot.slane %v3152_v9, 4 }
 0x1b5   : > { %v3141_v22 = vpop.trf.xlu1  ;;  %v3712_v2 = vpop.trf.xlu2 }
 0x1b6   : > { %v3145_v3 = vunpack.i.h.bf16 %v3141_v22  ;;  %v3142_v6 = vunpack.i.l.bf16 %v3141_v22  ;;  %v3163_v4 = vunpack.i.l.bf16 %v3712_v2  ;;  %v3166_v18 = vunpack.i.h.bf16 %v3712_v2 }
 0x1b8   : > { %v3715_v5 = vpop.trf.xlu0  ;;  %v1840_v10 = vrot.slane %v3145_v3, 4  ;;  %v1816_v13 = vrot.slane %v3142_v6, 4  ;;  %v1819_v17 = vsel %vm456_vm0, %v3142_v6, %v1818_v8  ;;  %v1706_v19 = vrot.slane %v3163_v4, 4 }
 0x1b9   : > { %v3156_v14 = vunpack.i.l.bf16 %v3715_v5  ;;  %v1705_v20 = vsel %vm456_vm0, %v1704_v55, %v3163_v4  ;;  %v3739_v32 = vperm.slane %v1819_v17, %v3578_v16  ;;  %v3743_v34 = vrot.slane %v3166_v18, 4 }
 0x1ba   : > { %v1817_v25 = vsel %vm456_vm0, %v1816_v13, %v3149_v21  ;;  %v1707_v35 = vsel %vm456_vm0, %v3135_v7, %v1706_v19  ;;  %v3747_v36 = vperm.slane %v1705_v20, %v3578_v16  ;;  %v3159_v40 = vunpack.i.h.bf16 %v3715_v5 }
 0x1bb   : > { %v1841_v26 = vsel %vm456_vm0, %v1840_v10, %v3156_v14  ;;  %v1842_v29 = vrot.slane %v3156_v14, 4  ;;  %v3757_v45 = vperm.slane %v1817_v25, %v3578_v16  ;;  %v3763_v54 = vperm.slane %v1707_v35, %v3578_v16 }
 0x1bc   : > { %v3751_v38 = vperm.slane %v1841_v26, %v3578_v16  ;;  %v3767_v56 = vrot.slane %v3159_v40, 4  ;;  %v1754_v61 = vrot.slane %v3747_v36, 4  ;;  %v1878_v22 = vrot.slane %v3739_v32, 4 }
 0x1bd   : > { %v3169_v58 = vpop.trf.xlu1  ;;  %v3720_v12 = vpop.trf.xlu2  ;;  %v1843_v46 = vsel %vm456_vm0, %v3145_v3, %v1842_v29  ;;  %v1866_v27 = vrot.slane %v3757_v45, 4 }
 0x1be   : > { %v3170_v15 = vunpack.i.l.bf16 %v3169_v58  ;;  %v3177_v24 = vunpack.i.l.bf16 %v3720_v12  ;;  %v3173_v33 = vunpack.i.h.bf16 %v3169_v58  ;;  %v3180_v49 = vunpack.i.h.bf16 %v3720_v12 }
 0x1bf   : > { %v3777_v62 = vperm.slane %v1843_v46, %v3578_v16  ;;  %v1890_v0 = vrot.slane %v3751_v38, 4 }
 0x1c0   : > { %v1928_v23 = vrot.slane %v3170_v15, 4  ;;  %v1930_v42 = vrot.slane %v3177_v24, 4  ;;  %v1952_v48 = vrot.slane %v3173_v33, 4  ;;  %v1940_v63 = vrot.slane %v3180_v49, 4 }
 0x1c2   : > { %v1929_v41 = vsel %vm456_vm0, %v1928_v23, %v3177_v24  ;;  %v1931_v52 = vsel %vm456_vm0, %v3170_v15, %v1930_v42 }
 0x1c3   : > { %v1935_v53 = vperm.slane %v1929_v41, %v3578_v16  ;;  %v3782_v6 = vperm.slane %v1931_v52, %v3578_v16 }
 0x1c5   : > { %v3183_v43 = vpop.trf.xlu1  ;;  %v3754_v44 = vpop.trf.xlu2  ;;  %v1978_v3 = vrot.slane %v1935_v53, 4 }
 0x1c6   : > { %v3184_v47 = vunpack.i.l.bf16 %v3183_v43  ;;  %v3187_v50 = vunpack.i.h.bf16 %v3183_v43  ;;  %v3215_v57 = vunpack.i.h.bf16 %v3754_v44  ;;  %v3212_v28 = vunpack.i.l.bf16 %v3754_v44 }
 0x1c7   : > { %v1902_v43 = vrot.slane %v3777_v62, 4 }
 0x1c8   : > { %v1954_v39 = vrot.slane %v3184_v47, 4  ;;  %v1953_v59 = vsel %vm456_vm0, %v1952_v48, %v3184_v47  ;;  %v1964_v21 = vrot.slane %v3187_v50, 4  ;;  %v2052_v10 = vrot.slane %v3215_v57, 4 }
 0x1c9   : > { %v1959_v8 = vperm.slane %v1953_v59, %v3578_v16  ;;  %v2042_v58 = vrot.slane %v3212_v28, 4 }
 0x1ca   : > { %v1955_v60 = vsel %vm456_vm0, %v3173_v33, %v1954_v39  ;;  %v1990_v33 = vrot.slane %v3782_v6, 4 }
 0x1cb   : > { %v3787_v4 = vperm.slane %v1955_v60, %v3578_v16  ;;  %v2002_v29 = vrot.slane %v1959_v8, 4 }
 0x1cd   : > { %v3190_v12 = vpop.trf.xlu1  ;;  %v3218_v13 = vpop.trf.xlu2 }
 0x1ce   : > { %v3194_v14 = vunpack.i.h.bf16 %v3190_v12  ;;  %v3191_v55 = vunpack.i.l.bf16 %v3190_v12  ;;  %v3222_v15 = vunpack.i.h.bf16 %v3218_v13  ;;  %v3219_v17 = vunpack.i.l.bf16 %v3218_v13 }
 0x1d0   : > { %v1966_v19 = vrot.slane %v3194_v14, 4  ;;  %v1941_v20 = vsel %vm456_vm0, %v1940_v63, %v3191_v55  ;;  %v1942_v23 = vrot.slane %v3191_v55, 4  ;;  %v1965_v24 = vsel %vm456_vm0, %v1964_v21, %v3194_v14 }
 0x1d1   : > { %v1947_v25 = vperm.slane %v1941_v20, %v3578_v16  ;;  %v1971_v26 = vperm.slane %v1965_v24, %v3578_v16  ;;  %v2076_v41 = vrot.slane %v3222_v15, 4  ;;  %v2066_v52 = vrot.slane %v3219_v17, 4 }
 0x1d2   : > { %v1967_v35 = vsel %vm456_vm0, %v3187_v50, %v1966_v19  ;;  %v1943_v42 = vsel %vm456_vm0, %v3180_v49, %v1942_v23  ;;  %v2014_v50 = vrot.slane %v3787_v4, 4 }
 0x1d3   : > { %v1976_v46 = vrot.slane %v1947_v25, 4  ;;  %v2000_v47 = vrot.slane %v1971_v26, 4  ;;  %v1979_v48 = vsel %vm456_vm0, %v1947_v25, %v1978_v3  ;;  %v2003_v39 = vsel %vm456_vm0, %v1971_v26, %v2002_v29 }
 0x1d4   : > { %v3804_v59 = vperm.slane %v1979_v48, %v3590_v37  ;;  %v3807_v60 = vperm.slane %v2003_v39, %v3590_v37  ;;  %v3813_v13 = vperm.slane %v1943_v42, %v3578_v16  ;;  %v3816_v3 = vperm.slane %v1967_v35, %v3578_v16 }
 0x1d5   : > { %v3197_v63 = vpop.trf.xlu1  ;;  %v3225_v21 = vpop.trf.xlu2  ;;  %v1977_v49 = vsel %vm456_vm0, %v1976_v46, %v1935_v53  ;;  %v2001_v12 = vsel %vm456_vm0, %v2000_v47, %v1959_v8 }
 0x1d6   : > { %v3201_v14 = vunpack.i.h.bf16 %v3197_v63  ;;  %v3198_v55 = vunpack.i.l.bf16 %v3197_v63  ;;  %v3229_v19 = vunpack.i.h.bf16 %v3225_v21  ;;  %v3226_v20 = vunpack.i.l.bf16 %v3225_v21 }
 0x1d7   : > { %v1983_v21 = vperm.slane %v1977_v49, %v3590_v37 }
 0x1d8   : > { %v2064_v23 = vrot.slane %v3201_v14, 4  ;;  %v2040_v24 = vrot.slane %v3198_v55, 4  ;;  %v2043_v25 = vsel %vm456_vm0, %v3198_v55, %v2042_v58  ;;  %v2067_v26 = vsel %vm456_vm0, %v3201_v14, %v2066_v52 }
 0x1d9   : > { %v3821_v53 = vperm.slane %v2043_v25, %v3578_v16  ;;  %v3824_v8 = vperm.slane %v2067_v26, %v3578_v16  ;;  %v2078_v29 = vrot.slane %v3229_v19, 4  ;;  %v2053_v35 = vsel %vm456_vm0, %v2052_v10, %v3226_v20 }
 0x1da   : > { %v2065_v42 = vsel %vm456_vm0, %v2064_v23, %v3219_v17  ;;  %v3828_v46 = vrot.slane %v3226_v20, 4  ;;  %v2059_v47 = vperm.slane %v2053_v35, %v3578_v16  ;;  %v2077_v48 = vsel %vm456_vm0, %v2076_v41, %v3229_v19 }
 0x1db   : > { %v3833_v58 = vsel %vm456_vm0, %v3222_v15, %v2078_v29  ;;  %v2083_v39 = vperm.slane %v2077_v48, %v3578_v16  ;;  %v2041_v52 = vsel %vm456_vm0, %v2040_v24, %v3212_v28  ;;  %v2071_v63 = vperm.slane %v2065_v42, %v3578_v16 }
 0x1dc   : > { %v2047_v10 = vperm.slane %v2041_v52, %v3578_v16  ;;  %v2088_v17 = vrot.slane %v2059_v47, 4  ;;  %v2007_v14 = vperm.slane %v2001_v12, %v3590_v37  ;;  %v2028_v20 = vrot.slane %v3807_v60, 4 }
 0x1dd   : > { %v3204_v55 = vpop.trf.xlu1  ;;  %v3232_v41 = vpop.trf.xlu2  ;;  %v2112_v19 = vrot.slane %v2083_v39, 4  ;;  %v2114_v15 = vrot.slane %v2071_v63, 4  ;;  %v2030_v23 = vrot.slane %v3804_v59, 4 }
 0x1de   : > { %v3208_v25 = vunpack.i.h.bf16 %v3204_v55  ;;  %v3205_v26 = vunpack.i.l.bf16 %v3204_v55  ;;  %v3236_v28 = vunpack.i.h.bf16 %v3232_v41  ;;  %v3233_v24 = vunpack.i.l.bf16 %v3232_v41 }
 0x1df   : > { %v2089_v49 = vsel %vm456_vm0, %v2088_v17, %v2047_v10  ;;  %v2031_v5 = vsel %vm456_vm0, %v3807_v60, %v2030_v23 }
 0x1e0   : > { %v1740_v29 = vrot.slane %v3208_v25, 4  ;;  %v1729_v35 = vsel %vm456_vm0, %v3736_v31, %v3205_v26  ;;  %v1730_v42 = vrot.slane %v3205_v26, 4  ;;  %v1853_v48 = vsel %vm456_vm0, %v3767_v56, %v3236_v28 }
 0x1e1   : > { %v3849_v12 = vperm.slane %v1729_v35, %v3578_v16  ;;  %v1854_v52 = vrot.slane %v3236_v28, 4  ;;  %v1829_v7 = vsel %vm456_vm0, %v3732_v30, %v3233_v24  ;;  %v1859_v41 = vperm.slane %v1853_v48, %v3578_v16 }
 0x1e2   : > { %v1731_v55 = vsel %vm456_vm0, %v3138_v11, %v1730_v42  ;;  %v3859_v31 = vrot.slane %v3233_v24, 4  ;;  %v2095_v17 = vperm.slane %v2089_v49, %v3590_v37  ;;  %v2113_v30 = vsel %vm456_vm0, %v2112_v19, %v2071_v63 }
 0x1e3   : > { %v3863_v26 = vperm.slane %v1731_v55, %v3578_v16  ;;  %v3868_v56 = vsel %vm456_vm0, %v3159_v40, %v1854_v52  ;;  %v2024_v28 = vrot.slane %v2007_v14, 4  ;;  %v2119_v1 = vperm.slane %v2113_v30, %v3590_v37 }
 0x1e4   : > { %v2138_v11 = vrot.slane %v2095_v17, 4  ;;  %v2026_v35 = vrot.slane %v1983_v21, 4  ;;  %v2090_v42 = vrot.slane %v2047_v10, 4  ;;  %v2115_v49 = vsel %vm456_vm0, %v2083_v39, %v2114_v15 }
 0x1e5   : > { %v2025_v24 = vsel %vm456_vm0, %v2024_v28, %v1983_v21  ;;  %v3239_v48 = vpop.trf.xlu1  ;;  %v2029_v55 = vsel %vm456_vm0, %v2028_v20, %v3804_v59  ;;  %v2136_v40 = vrot.slane %v2119_v1, 4  ;;  %v2123_v21 = vperm.slane %v2115_v49, %v3590_v37 }
 0x1e6   : > { %v2139_v63 = vsel %vm456_vm0, %v2119_v1, %v2138_v11  ;;  %v2027_v19 = vsel %vm456_vm0, %v2007_v14, %v2026_v35  ;;  %v2091_v52 = vsel %vm456_vm0, %v2059_v47, %v2090_v42  ;;  %v3243_v39 = vunpack.i.h.bf16 %v3239_v48 }
 0x1e7   : > { %2218 = vmatpush.msra.mxu1 %v2139_v63  ;;  %v2099_v10 = vperm.slane %v2091_v52, %v3590_v37  ;;  %v2137_v15 = vsel %vm456_vm0, %v2136_v40, %v2095_v17  ;;  %v3240_v30 = vunpack.i.l.bf16 %v3239_v48  ;;  %v1835_v59 = vperm.slane %v1829_v7, %v3578_v16 }
 0x1e8   : > { %2177 = vmatpush.msra.mxu0 %v2137_v15  ;;  %v2140_v60 = vrot.slane %v2123_v21, 4  ;;  %v1741_v23 = vsel %vm456_vm0, %v1740_v29, %v3243_v39  ;;  %v1742_v14 = vrot.slane %v3243_v39, 4  ;;  %v1888_v49 = vrot.slane %v1859_v41, 4 }
 0x1e9   : > { %2219 = vmatpush.msra.mxu1 %v2027_v19  ;;  %v2142_v20 = vrot.slane %v2099_v10, 4  ;;  %v3887_v47 = vperm.slane %v1741_v23, %v3578_v16  ;;  %v1717_v28 = vsel %vm456_vm0, %v3743_v34, %v3240_v30  ;;  %v3891_v1 = vrot.slane %v3240_v30, 4 }
 0x1ea   : > { %v1867_v17 = vsel %vm456_vm0, %v1835_v59, %v1866_v27  ;;  %2178 = vmatpush.msra.mxu0 %v2025_v24  ;;  %v2141_v7 = vsel %vm456_vm0, %v2140_v60, %v2099_v10  ;;  %v3899_v29 = vsel %vm456_vm0, %v3208_v25, %v1742_v14  ;;  %v1891_v34 = vsel %vm456_vm0, %v1859_v41, %v1890_v0 }
 0x1eb   : > { %v2143_v11 = vsel %vm456_vm0, %v2123_v21, %v2142_v20  ;;  %v1875_v35 = vperm.slane %v1867_v17, %v3590_v37  ;;  %2259 = vmatpush.msra.mxu2 %v2141_v7  ;;  %v1864_v42 = vrot.slane %v1835_v59, 4  ;;  %v1723_v27 = vperm.slane %v1717_v28, %v3578_v16 }
 0x1ec   : > { %2300 = vmatpush.msra.mxu3 %v2143_v11  ;;  %v1899_v24 = vperm.slane %v1891_v34, %v3590_v37  ;;  %v1778_v40 = vrot.slane %v3849_v12, 4  ;;  %v2055_v25 = vsel %vm456_vm0, %v3215_v57, %v3828_v46  ;;  %v1889_v0 = vsel %vm456_vm0, %v1888_v49, %v3751_v38 }
 0x1ed   : > { %v1918_v48 = vrot.slane %v1875_v35, 4  ;;  %2260 = vmatpush.msra.mxu2 %v2029_v55  ;;  %v1865_v63 = vsel %vm456_vm0, %v1864_v42, %v3757_v45  ;;  %v1755_v41 = vsel %vm456_vm0, %v1723_v27, %v1754_v61  ;;  %v2102_v19 = vrot.slane %v3821_v53, 4 }
 0x1ee   : > { %2301 = vmatpush.msra.mxu3 %v2031_v5  ;;  %v1916_v52 = vrot.slane %v1899_v24, 4  ;;  %v1871_v44 = vperm.slane %v1865_v63, %v3590_v37  ;;  %v1895_v57 = vperm.slane %v1889_v0, %v3590_v37  ;;  %v1763_v46 = vperm.slane %v1755_v41, %v3590_v37  ;;  %v299_v41 = vld [vmem:[%s3570_s27 + $0x20] sm:$0xff] }
 0x1ef   : > { %v1919_v10 = vsel %vm456_vm0, %v1899_v24, %v1918_v48  ;;  %v1779_v45 = vsel %vm456_vm0, %v3887_v47, %v1778_v40  ;;  %v2063_v38 = vperm.slane %v2055_v25, %v3578_v16  ;;  %v2087_v61 = vperm.slane %v3833_v58, %v3578_v16  ;;  %v303_v24 = vld [vmem:[%s3570_s27 + $0x40] sm:$0xff] }
 0x1f0   : > { %2302 = vmatpush.msra.mxu3 %v1919_v10  ;;  %v1917_v55 = vsel %vm456_vm0, %v1916_v52, %v1875_v35  ;;  %v1912_v5 = vrot.slane %v1895_v57, 4  ;;  %v1914_v21 = vrot.slane %v1871_v44, 4  ;;  %v1787_v39 = vperm.slane %v1779_v45, %v3590_v37 }
 0x1f1   : > { %2261 = vmatpush.msra.mxu2 %v1917_v55  ;;  %v1806_v15 = vrot.slane %v1763_v46, 4  ;;  %v2103_v30 = vsel %vm456_vm0, %v2063_v38, %v2102_v19  ;;  %v2126_v59 = vrot.slane %v3824_v8, 4  ;;  %v1752_v60 = vrot.slane %v1723_v27, 4  ;;  %v307_v27 = vld [vmem:[%s3570_s27 + $0x60] sm:$0xff] }
 0x1f2   : > { %v1913_v20 = vsel %vm456_vm0, %v1912_v5, %v1871_v44  ;;  %v1915_v23 = vsel %vm456_vm0, %v1895_v57, %v1914_v21  ;;  %v1804_v58 = vrot.slane %v1787_v39, 4  ;;  %v2111_v14 = vperm.slane %v2103_v30, %v3590_v37 }
 0x1f3   : > { %2179 = vmatpush.msra.mxu0 %v1913_v20  ;;  %2220 = vmatpush.msra.mxu1 %v1915_v23  ;;  %v1807_v28 = vsel %vm456_vm0, %v1787_v39, %v1806_v15  ;;  %v2127_v17 = vsel %vm456_vm0, %v2087_v61, %v2126_v59  ;;  %v1753_v7 = vsel %vm456_vm0, %v1752_v60, %v3747_v36  ;;  %v1776_v11 = vrot.slane %v3887_v47, 4 }
 0x1f4   : > { %v1805_v35 = vsel %vm456_vm0, %v1804_v58, %v1763_v46  ;;  %2303 = vmatpush.msra.mxu3 %v1807_v28  ;;  %v2135_v34 = vperm.slane %v2127_v17, %v3590_v37  ;;  %v2150_v42 = vrot.slane %v2111_v14, 4  ;;  %v1759_v49 = vperm.slane %v1753_v7, %v3590_v37  ;;  %v308_v58 = vld [vmem:[%s3570_s27 + $0x68] sm:$0xff] }
 0x1f5   : > { %2262 = vmatpush.msra.mxu2 %v1805_v35  ;;  %v1777_v48 = vsel %vm456_vm0, %v1776_v11, %v3849_v12  ;;  %v2100_v40 = vrot.slane %v2063_v38, 4  ;;  %v2124_v36 = vrot.slane %v2087_v61, 4  ;;  %2981 = vmatmul.msk.f32.vlgmr.msra.gmra.mxu3 %vm2152_vm1, %v307_v27  ;;  %v1991_v52 = vsel %vm456_vm0, %v3813_v13, %v1990_v33 }
 0x1f6   : > { %v2148_v25 = vrot.slane %v2135_v34, 4  ;;  %v2151_v47 = vsel %vm456_vm0, %v2135_v34, %v2150_v42  ;;  %v1783_v63 = vperm.slane %v1777_v48, %v3590_v37  ;;  %v1802_v0 = vrot.slane %v1759_v49, 4  ;;  %2977 = vmatmul.msk.f32.vlgmr.msra.gmra.mxu2 %vm2152_vm1, %v303_v24  ;;  %v300_v42 = vld [vmem:[%s3570_s27 + $0x28] sm:$0xff] }
 0x1f7   : > { %2464 = vmatpush.msrb.mxu3 %v2151_v47  ;;  %v2101_v19 = vsel %vm456_vm0, %v2100_v40, %v3821_v53  ;;  %v2125_v12 = vsel %vm456_vm0, %v2124_v36, %v3824_v8  ;;  %v2015_v10 = vsel %vm456_vm0, %v3816_v3, %v2014_v50  ;;  %v295_v8 = vld [vmem:[%s3570_s27] sm:$0xff]  ;;  %v1999_v38 = vperm.slane %v1991_v52, %v3590_v37  ;;  %v296_v24 = vld [vmem:[%s3570_s27 + $0x8] sm:$0xff]  ;;  %v305_v52 = vld [vmem:[%s3570_s27 + $0x50] sm:$0xff] }
 0x1f8   : > { %v2149_v44 = vsel %vm456_vm0, %v2148_v25, %v2111_v14  ;;  %v1800_v57 = vrot.slane %v1783_v63, 4  ;;  %v1803_v46 = vsel %vm456_vm0, %v1783_v63, %v1802_v0  ;;  %v2107_v53 = vperm.slane %v2101_v19, %v3590_v37 }
 0x1f9   : > { %2423 = vmatpush.msrb.mxu2 %v2149_v44  ;;  %2221 = vmatpush.msra.mxu1 %v1803_v46  ;;  %v2131_v45 = vperm.slane %v2125_v12, %v3590_v37  ;;  %v2023_v33 = vperm.slane %v2015_v10, %v3590_v37  ;;  %v1988_v61 = vrot.slane %v3813_v13, 4  ;;  %v2012_v5 = vrot.slane %v3816_v3, 4 }
 0x1fa   : > { %v1801_v50 = vsel %vm456_vm0, %v1800_v57, %v1759_v49  ;;  %2973 = vmatmul.msk.f32.vlgmr.msra.gmra.mxu1 %vm2152_vm1, %v299_v41  ;;  %v2146_v55 = vrot.slane %v2107_v53, 4  ;;  %v1831_v21 = vsel %vm456_vm0, %v3152_v9, %v3859_v31  ;;  %v2038_v30 = vrot.slane %v1999_v38, 4  ;;  %v304_v9 = vld [vmem:[%s3570_s27 + $0x48] sm:$0xff] }
 0x1fb   : > { %2180 = vmatpush.msra.mxu0 %v1801_v50  ;;  %v2144_v39 = vrot.slane %v2131_v45, 4  ;;  %v2036_v15 = vrot.slane %v2023_v33, 4  ;;  %v1989_v13 = vsel %vm456_vm0, %v1988_v61, %v3782_v6  ;;  %v2013_v3 = vsel %vm456_vm0, %v2012_v5, %v3787_v4  ;;  %v301_v50 = vld [vmem:[%s3570_s27 + $0x30] sm:$0xff] }
 0x1fc   : > { %2969 = vmatmul.msk.f32.vlgmr.msra.gmra.mxu0 %vm2152_vm1, %v295_v8  ;;  %v2147_v59 = vsel %vm456_vm0, %v2131_v45, %v2146_v55  ;;  %v1995_v60 = vperm.slane %v1989_v13, %v3590_v37  ;;  %v1839_v51 = vperm.slane %v1831_v21, %v3578_v16  ;;  %v2039_v6 = vsel %vm456_vm0, %v2023_v33, %v2038_v30 }
 0x1fd   : > { %v2145_v31 = vsel %vm456_vm0, %v2144_v39, %v2107_v53  ;;  %2382 = vmatpush.msrb.mxu1 %v2147_v59  ;;  %v2037_v20 = vsel %vm456_vm0, %v2036_v15, %v1999_v38  ;;  %v2019_v23 = vperm.slane %v2013_v3, %v3590_v37  ;;  %v1863_v4 = vperm.slane %v3868_v56, %v3578_v16  ;;  %v309_v53 = vld [vmem:[%s3570_s27 + $0x70] sm:$0xff]  ;;  %v306_v59 = vld [vmem:[%s3570_s27 + $0x58] sm:$0xff] }
 0x1fe   : > { %2341 = vmatpush.msrb.mxu0 %v2145_v31  ;;  %2424 = vmatpush.msrb.mxu2 %v2037_v20  ;;  %v2034_v14 = vrot.slane %v1995_v60, 4  ;;  %v1879_v28 = vsel %vm456_vm0, %v1839_v51, %v1878_v22  ;;  %v1876_v17 = vrot.slane %v1839_v51, 4  ;;  %v1719_v35 = vsel %vm456_vm0, %v3166_v18, %v3891_v1  ;;  %v297_v39 = vld [vmem:[%s3570_s27 + $0x10] sm:$0xff]  ;;  %v302_v3 = vld [vmem:[%s3570_s27 + $0x38] sm:$0xff]  ;;  %v323_v31 = vld [vmem:[%s3570_s27 + $0xe0] sm:$0xff] }
 0x1ff   : > { %2465 = vmatpush.msrb.mxu3 %v2039_v6  ;;  %v2032_v7 = vrot.slane %v2019_v23, 4  ;;  %v1887_v11 = vperm.slane %v1879_v28, %v3590_v37  ;;  %v1751_v34 = vperm.slane %v3899_v29, %v3578_v16  ;;  %2978 = vmatmul.msk.f32.gmra.mxu2 %vm2152_vm1, %v304_v9  ;;  %v1903_v22 = vsel %vm456_vm0, %v1863_v4, %v1902_v43  ;;  %v298_v51 = vld [vmem:[%s3570_s27 + $0x18] sm:$0xff]  ;;  %v319_v9 = vld [vmem:[%s3570_s27 + $0xc0] sm:$0xff]  ;;  %v321_v28 = vld [vmem:[%s3570_s27 + $0xd0] sm:$0xff] }
 0x200   : > { %v2035_v56 = vsel %vm456_vm0, %v2019_v23, %v2034_v14  ;;  %v1877_v49 = vsel %vm456_vm0, %v1876_v17, %v3739_v32  ;;  %v1900_v27 = vrot.slane %v1863_v4, 4  ;;  %2982 = vmatmul.msk.f32.gmra.mxu3 %vm2152_vm1, %v308_v58  ;;  %v1911_v18 = vperm.slane %v1903_v22, %v3590_v37  ;;  %v315_v20 = vld [vmem:[%s3570_s27 + $0xa0] sm:$0xff]  ;;  %v320_v23 = vld [vmem:[%s3570_s27 + $0xc8] sm:$0xff]  ;;  %v325_v17 = vld [vmem:[%s3570_s27 + $0xf0] sm:$0xff] }
 0x201   : > { %v2033_v2 = vsel %vm456_vm0, %v2032_v7, %v1995_v60  ;;  %2383 = vmatpush.msrb.mxu1 %v2035_v56  ;;  %v1926_v1 = vrot.slane %v1887_v11, 4  ;;  %v1883_v29 = vperm.slane %v1877_v49, %v3590_v37  ;;  %v1727_v48 = vperm.slane %v1719_v35, %v3578_v16  ;;  %v310_v60 = vld [vmem:[%s3570_s27 + $0x78] sm:$0xff]  ;;  %v311_v6 = vld [vmem:[%s3570_s27 + $0x80] sm:$0xff]  ;;  %v324_v58 = vld [vmem:[%s3570_s27 + $0xe8] sm:$0xff] }
 0x202   : > { %2342 = vmatpush.msrb.mxu0 %v2033_v2  ;;  %v1901_v43 = vsel %vm456_vm0, %v1900_v27, %v3777_v62  ;;  %v1790_v32 = vrot.slane %v3863_v26, 4  ;;  %v1788_v40 = vrot.slane %v1751_v34, 4  ;;  %2974 = vmatmul.msk.f32.gmra.mxu1 %vm2152_vm1, %v300_v42  ;;  %v1924_v36 = vrot.slane %v1911_v18, 4  ;;  %v316_v14 = vld [vmem:[%s3570_s27 + $0xa8] sm:$0xff]  ;;  %v317_v7 = vld [vmem:[%s3570_s27 + $0xb0] sm:$0xff]  ;;  %v322_v35 = vld [vmem:[%s3570_s27 + $0xd8] sm:$0xff] }
 0x203   : > { %v1927_v25 = vsel %vm456_vm0, %v1911_v18, %v1926_v1  ;;  %v1907_v47 = vperm.slane %v1901_v43, %v3590_v37  ;;  %v1922_v63 = vrot.slane %v1883_v29, 4  ;;  %v4185_v0 = vrot.slane %v3763_v54, 4  ;;  %v312_v4 = vld [vmem:[%s3570_s27 + $0x88] sm:$0xff]  ;;  %v318_v42 = vld [vmem:[%s3570_s27 + $0xb8] sm:$0xff] }
 0x204   : > { %2466 = vmatpush.msrb.mxu3 %v1927_v25  ;;  %v1791_v62 = vsel %vm456_vm0, %v1751_v34, %v1790_v32  ;;  %v1764_v19 = vrot.slane %v1727_v48, 4  ;;  %v1789_v12 = vsel %vm456_vm0, %v1788_v40, %v3863_v26  ;;  %2970 = vmatmul.msk.f32.gmra.mxu0 %vm2152_vm1, %v296_v24  ;;  %v1925_v10 = vsel %vm456_vm0, %v1924_v36, %v1887_v11  ;;  %v313_v11 = vld [vmem:[%s3570_s27 + $0x90] sm:$0xff]  ;;  %v326_v34 = vld [vmem:[%s3570_s27 + $0xf8] sm:$0xff] }
 0x205   : > { %v1767_v41 = vsel %vm456_vm0, %v1727_v48, %v4185_v0  ;;  %v1920_v44 = vrot.slane %v1907_v47, 4  ;;  %v1923_v57 = vsel %vm456_vm0, %v1907_v47, %v1922_v63  ;;  %2425 = vmatpush.msrb.mxu2 %v1925_v10  ;;  %v1799_v8 = vperm.slane %v1791_v62, %v3590_v37  ;;  %v314_v56 = vld [vmem:[%s3570_s27 + $0x98] sm:$0xff] }
 0x206   : > { %v1775_v46 = vperm.slane %v1767_v41, %v3590_v37  ;;  %2384 = vmatpush.msrb.mxu1 %v1923_v57  ;;  %v1765_v26 = vsel %vm456_vm0, %v1764_v19, %v3763_v54  ;;  %v1795_v45 = vperm.slane %v1789_v12, %v3590_v37 }
 0x207   : > { %v1921_v38 = vsel %vm456_vm0, %v1920_v44, %v1883_v29  ;;  %v1771_v61 = vperm.slane %v1765_v26, %v3590_v37  ;;  %2979 = vmatmul.msk.f32.gmra.mxu2 %vm2152_vm1, %v305_v52  ;;  %v1812_v55 = vrot.slane %v1799_v8, 4 }
 0x208   : > { %v1814_v33 = vrot.slane %v1775_v46, 4  ;;  %2343 = vmatpush.msrb.mxu0 %v1921_v38  ;;  %v1808_v5 = vrot.slane %v1795_v45, 4  ;;  %2983 = vmatmul.msk.f32.gmra.mxu3 %vm2152_vm1, %v309_v53 }
 0x209   : > { %v1810_v21 = vrot.slane %v1771_v61, 4  ;;  %v1813_v15 = vsel %vm456_vm0, %v1812_v55, %v1775_v46 }
 0x20a   : > { %v1815_v54 = vsel %vm456_vm0, %v1799_v8, %v1814_v33  ;;  %v1809_v30 = vsel %vm456_vm0, %v1808_v5, %v1771_v61  ;;  %2975 = vmatmul.msk.f32.gmra.mxu1 %vm2152_vm1, %v301_v50  ;;  %2426 = vmatpush.msrb.mxu2 %v1813_v15 }
 0x20b   : > { %2467 = vmatpush.msrb.mxu3 %v1815_v54  ;;  %2344 = vmatpush.msrb.mxu0 %v1809_v30  ;;  %v1811_v13 = vsel %vm456_vm0, %v1795_v45, %v1810_v21 }
 0x20c   : > { %2385 = vmatpush.msrb.mxu1 %v1811_v13  ;;  %2971 = vmatmul.msk.f32.gmra.mxu0 %vm2152_vm1, %v297_v39 }
 0x20f   : > { %2980 = vmatmul.msk.f32.gmra.mxu2 %vm2152_vm1, %v306_v59 }
 0x210   : > { %2984 = vmatmul.msk.f32.gmra.mxu3 %vm2152_vm1, %v310_v60 }
 0x212   : > { %2976 = vmatmul.msk.f32.gmra.mxu1 %vm2152_vm1, %v302_v3 }
 0x214   : > { %2972 = vmatmul.msk.f32.gmra.mxu0 %vm2152_vm1, %v298_v51 }
 0x217   : > { %2993 = vmatmul.msk.f32.vlgmr.msrb.gmra.mxu2 %vm2152_vm1, %v319_v9 }
 0x218   : > { %2997 = vmatmul.msk.f32.vlgmr.msrb.gmra.mxu3 %vm2152_vm1, %v323_v31 }
 0x21a   : > { %2989 = vmatmul.msk.f32.vlgmr.msrb.gmra.mxu1 %vm2152_vm1, %v315_v20 }
 0x21c   : > { %2985 = vmatmul.msk.f32.vlgmr.msrb.gmra.mxu0 %vm2152_vm1, %v311_v6 }
 0x21f   : > { %2994 = vmatmul.msk.f32.gmra.mxu2 %vm2152_vm1, %v320_v23 }
 0x220   : > { %2998 = vmatmul.msk.f32.gmra.mxu3 %vm2152_vm1, %v324_v58 }
 0x222   : > { %2990 = vmatmul.msk.f32.gmra.mxu1 %vm2152_vm1, %v316_v14 }
 0x224   : > { %2986 = vmatmul.msk.f32.gmra.mxu0 %vm2152_vm1, %v312_v4 }
 0x227   : > { %2995 = vmatmul.msk.f32.gmra.mxu2 %vm2152_vm1, %v321_v28 }
 0x228   : > { %2999 = vmatmul.msk.f32.gmra.mxu3 %vm2152_vm1, %v325_v17 }
 0x22a   : > { %2991 = vmatmul.msk.f32.gmra.mxu1 %vm2152_vm1, %v317_v7 }
 0x22c   : > { %2987 = vmatmul.msk.f32.gmra.mxu0 %vm2152_vm1, %v313_v11 }
 0x22f   : > { %2996 = vmatmul.msk.f32.gmra.mxu2 %vm2152_vm1, %v322_v35 }
 0x230   : > { %3000 = vmatmul.msk.f32.gmra.mxu3 %vm2152_vm1, %v326_v34 }
 0x232   : > { %2992 = vmatmul.msk.f32.gmra.mxu1 %vm2152_vm1, %v318_v42 }
 0x234   : > { %2988 = vmatmul.msk.f32.gmra.mxu0 %vm2152_vm1, %v314_v56 }
 0x277   : > { %v2223_v22 = vpop.f32.mrf.mxu1 }
 0x278   : > { %2513 = vxpose.xlu1.b32.start [1/4] (short) (narrow) %v2223_v22, 8  ;;  %v2305_v43 = vpop.f32.mrf.mxu3  ;;  %v2793_v22 = vld [vmem:[%s254_s28] sm:$0xff] }
 0x279   : > { %v2182_v49 = vpop.f32.mrf.mxu0  ;;  %v2264_v27 = vpop.f32.mrf.mxu2 }
 0x27a   : > { %2481 = vxpose.xlu2.b32.start [1/4] (short) (narrow) %v2182_v49, 8  ;;  %2545 = vxpose.xlu0.b32.start [1/4] (short) (narrow) %v2264_v27, 8 }
 0x27f   : > { %v2226_v2 = vpop.f32.mrf.mxu1 }
 0x280   : > { %2514 = vxpose.xlu1.b32.cont [2/4] (short) (narrow) %v2226_v2, 8 }
 0x281   : > { %v2185_v18 = vpop.f32.mrf.mxu0 }
 0x282   : > { %2482 = vxpose.xlu2.b32.cont [2/4] (short) (narrow) %v2185_v18, 8  ;;  %v2267_v1 = vpop.f32.mrf.mxu2 }
 0x283   : > { %2546 = vxpose.xlu0.b32.cont [2/4] (short) (narrow) %v2267_v1, 8  ;;  %v2308_v25 = vpop.f32.mrf.mxu3 }
 0x287   : > { %v2229_v29 = vpop.f32.mrf.mxu1 }
 0x288   : > { %2515 = vxpose.xlu1.b32.cont [3/4] (short) (narrow) %v2229_v29, 8 }
 0x289   : > { %v2188_v24 = vpop.f32.mrf.mxu0 }
 0x28a   : > { %2483 = vxpose.xlu2.b32.cont [3/4] (short) (narrow) %v2188_v24, 8  ;;  %v2270_v48 = vpop.f32.mrf.mxu2 }
 0x28b   : > { %2547 = vxpose.xlu0.b32.cont [3/4] (short) (narrow) %v2270_v48, 8  ;;  %v2311_v0 = vpop.f32.mrf.mxu3 }
 0x28f   : > { %v2232_v32 = vpop.f32.mrf.mxu1 }
 0x290   : > { %2516 = vxpose.xlu1.b32.end [4/4] (short) (narrow) %v2232_v32, 8 }
 0x291   : > { %v2191_v40 = vpop.f32.mrf.mxu0 }
 0x292   : > { %2484 = vxpose.xlu2.b32.end [4/4] (short) (narrow) %v2191_v40, 8  ;;  %v2273_v36 = vpop.f32.mrf.mxu2 }
 0x293   : > { %2548 = vxpose.xlu0.b32.end [4/4] (short) (narrow) %v2273_v36, 8  ;;  %v2314_v19 = vpop.f32.mrf.mxu3 }
 0x297   : > { %v2387_v63 = vpop.f32.mrf.mxu1 }
 0x299   : > { %v2346_v47 = vpop.f32.mrf.mxu0 }
 0x29a   : > { %2577 = vxpose.xlu2.b32.start [1/4] (short) (narrow) %v2305_v43, 8  ;;  %2609 = vxpose.xlu1.b32.start [1/4] (short) (narrow) %v2346_v47, 8  ;;  %v2428_v10 = vpop.f32.mrf.mxu2 }
 0x29b   : > { %2641 = vxpose.xlu0.b32.start [1/4] (short) (narrow) %v2387_v63, 8  ;;  %v2469_v57 = vpop.f32.mrf.mxu3 }
 0x29f   : > { %v2390_v62 = vpop.f32.mrf.mxu1 }
 0x2a1   : > { %v2349_v41 = vpop.f32.mrf.mxu0 }
 0x2a2   : > { %2578 = vxpose.xlu2.b32.cont [2/4] (short) (narrow) %v2308_v25, 8  ;;  %2610 = vxpose.xlu1.b32.cont [2/4] (short) (narrow) %v2349_v41, 8  ;;  %v2431_v8 = vpop.f32.mrf.mxu2 }
 0x2a3   : > { %2642 = vxpose.xlu0.b32.cont [2/4] (short) (narrow) %v2390_v62, 8  ;;  %v2472_v53 = vpop.f32.mrf.mxu3 }
 0x2a7   : > { %v2393_v52 = vpop.f32.mrf.mxu1 }
 0x2a9   : > { %v2352_v12 = vpop.f32.mrf.mxu0 }
 0x2aa   : > { %2579 = vxpose.xlu2.b32.cont [3/4] (short) (narrow) %v2311_v0, 8  ;;  %2611 = vxpose.xlu1.b32.cont [3/4] (short) (narrow) %v2352_v12, 8  ;;  %v2434_v45 = vpop.f32.mrf.mxu2 }
 0x2ab   : > { %2643 = vxpose.xlu0.b32.cont [3/4] (short) (narrow) %v2393_v52, 8  ;;  %v2475_v26 = vpop.f32.mrf.mxu3 }
 0x2af   : > { %v2396_v46 = vpop.f32.mrf.mxu1 }
 0x2b1   : > { %v2355_v44 = vpop.f32.mrf.mxu0 }
 0x2b2   : > { %2580 = vxpose.xlu2.b32.end [4/4] (short) (narrow) %v2314_v19, 8  ;;  %2612 = vxpose.xlu1.b32.end [4/4] (short) (narrow) %v2355_v44, 8  ;;  %v2437_v33 = vpop.f32.mrf.mxu2 }
 0x2b3   : > { %2644 = vxpose.xlu0.b32.end [4/4] (short) (narrow) %v2396_v46, 8  ;;  %v2478_v38 = vpop.f32.mrf.mxu3 }
 0x2ba   : > { %2705 = vxpose.xlu1.b32.start [1/4] (short) (narrow) %v2469_v57, 8  ;;  %2673 = vxpose.xlu2.b32.start [1/4] (short) (narrow) %v2428_v10, 8 }
 0x2c2   : > { %2706 = vxpose.xlu1.b32.cont [2/4] (short) (narrow) %v2472_v53, 8  ;;  %2674 = vxpose.xlu2.b32.cont [2/4] (short) (narrow) %v2431_v8, 8 }
 0x2ca   : > { %2707 = vxpose.xlu1.b32.cont [3/4] (short) (narrow) %v2475_v26, 8  ;;  %2675 = vxpose.xlu2.b32.cont [3/4] (short) (narrow) %v2434_v45, 8 }
 0x2d2   : > { %2708 = vxpose.xlu1.b32.end [4/4] (short) (narrow) %v2478_v38, 8  ;;  %2676 = vxpose.xlu2.b32.end [4/4] (short) (narrow) %v2437_v33, 8 }
 0x313   : > { %v2497_v61 = vpop.trf.xlu2 }
 0x31c   : > { %v2529_v50 = vpop.trf.xlu1 }
 0x31f   : > { %v2561_v55 = vpop.trf.xlu0 }
 0x320   : > { %v2737_v54 = vrot.slane %v2561_v55, 4 }
 0x322   : > { %v2738_v39 = vsel %vm456_vm0, %v2737_v54, %v2497_v61 }
 0x323   : > { %v2742_v59 = vperm.slane %v2738_v39, %v3578_v16 }
 0x325   : > { %v2763_v51 = vrot.slane %v2742_v59, 4 }
 0x333   : > { %v2593_v5 = vpop.trf.xlu2 }
 0x334   : > { %v2743_v21 = vrot.slane %v2593_v5, 4 }
 0x336   : > { %v2744_v13 = vsel %vm456_vm0, %v2743_v21, %v2529_v50 }
 0x337   : > { %v2748_v3 = vperm.slane %v2744_v13, %v3578_v16 }
 0x339   : > { %v2761_v31 = vrot.slane %v2748_v3, 4  ;;  %v2764_v20 = vsel %vm456_vm0, %v2748_v3, %v2763_v51 }
 0x33a   : > { %v2772_v28 = vperm.slane %v2764_v20, %v3590_v37 }
 0x33b   : > { %v2762_v4 = vsel %vm456_vm0, %v2761_v31, %v2742_v59 }
 0x33c   : > { %v2768_v35 = vperm.slane %v2762_v4, %v3590_v37  ;;  %v2791_v56 = vrot.slane %v2772_v28, 4 }
 0x33e   : > { %v2625_v30 = vpop.trf.xlu1  ;;  %v2787_v2 = vrot.slane %v2768_v35, 4 }
 0x33f   : > { %v2657_v58 = vpop.trf.xlu0 }
 0x353   : > { %v2689_v15 = vpop.trf.xlu2 }
 0x354   : > { %v2749_v60 = vrot.slane %v2689_v15, 4 }
 0x356   : > { %v2750_v9 = vsel %vm456_vm0, %v2749_v60, %v2625_v30 }
 0x357   : > { %v2754_v6 = vperm.slane %v2750_v9, %v3578_v16 }
 0x359   : > { %v2775_v7 = vrot.slane %v2754_v6, 4 }
 0x35e   : > { %v2721_v23 = vpop.trf.xlu1 }
 0x35f   : > { %v2755_v14 = vrot.slane %v2721_v23, 4 }
 0x361   : > { %v2756_v17 = vsel %vm456_vm0, %v2755_v14, %v2657_v58 }
 0x362   : > { %v2760_v11 = vperm.slane %v2756_v17, %v3578_v16 }
 0x364   : > { %v2773_v34 = vrot.slane %v2760_v11, 4  ;;  %v2776_v42 = vsel %vm456_vm0, %v2760_v11, %v2775_v7 }
 0x365   : > { %v2784_v49 = vperm.slane %v2776_v42, %v3590_v37 }
 0x366   : > { %v2774_v27 = vsel %vm456_vm0, %v2773_v34, %v2754_v6 }
 0x367   : > { %v2780_v18 = vperm.slane %v2774_v27, %v3590_v37  ;;  %v2789_v1 = vrot.slane %v2784_v49, 4  ;;  %v2792_v16 = vsel %vm456_vm0, %v2784_v49, %v2791_v56 }
 0x368   : > { %v2797_v29 = vadd.f32 %v2793_v22, %v2792_v16 }
 0x369   : > { %v2785_v24 = vrot.slane %v2780_v18, 4  ;;  %v2788_v43 = vsel %vm456_vm0, %v2780_v18, %v2787_v2  ;;  %v2790_v48 = vsel %vm456_vm0, %v2789_v1, %v2772_v28 }
 0x36a   : > { %v2795_v32 = vadd.f32 %v2793_v22, %v2788_v43  ;;  %v2796_v40 = vadd.f32 %v2793_v22, %v2790_v48  ;;  %v2801_v37 = vmul.f32 2.0, %v2797_v29 }
 0x36b   : > { %v2786_v36 = vsel %vm456_vm0, %v2785_v24, %v2768_v35 }
 0x36c   : > { %v2794_v25 = vadd.f32 %v2793_v22, %v2786_v36  ;;  %v2799_v47 = vmul.f32 2.0, %v2795_v32  ;;  %v2800_v63 = vmul.f32 2.0, %v2796_v40  ;;  %2805 = vst.msk [vmem:[%s287_s15 + $0x18] sm:$0xff] %vm2152_vm1, %v2801_v37 }
 0x36e   : > { %v2798_v0 = vmul.f32 2.0, %v2794_v25  ;;  %2803 = vst.msk [vmem:[%s287_s15 + $0x8] sm:$0xff] %vm2152_vm1, %v2799_v47 }
 0x36f   : > { %2804 = vst.msk [vmem:[%s287_s15 + $0x10] sm:$0xff] %vm2152_vm1, %v2800_v63 }
 0x370   : > { %2802 = vst.msk [vmem:[%s287_s15] sm:$0xff] %vm2152_vm1, %v2798_v0 }
 0x371   : > { %3361 = shalt.err (!%p3358_p13)
}
 0x372   : > { %s3427_s11 = smov 128   ;;  %s3428_s1 = smov 256  }
 0x373   : > { %s3429_s14 = smov 8  }
 0x374   : > { %3013 = dma.vmem_to_hbm [thread:$0]  (%p3505_p9), %s2822_s22, 512, %s2824_s23, %s2807_s4, %s3427_s11, %s3428_s1, %s3429_s14  }
 0x375 PF: > { %s4186_s20 = sld [smem:[#allocation12_spill]]  ;;  %p3026_p0 = pnand %p2955_p12, %p3512_p11 }
 0x376   : > { %s4188_s12 = sld [smem:[#allocation15_spill]] }
 0x377   : > { %p3027_p1 = pneg %p3026_p0 }
 0x37b   : > { %s2838_s16 = sand.u32 1, %s4186_s20  }
 0x37c   : > { %s2839_s26 = scalar_lea.sflag [#allocation4], %s2838_s16 }
 0x37d   : > { %3395 = dma.done.wait (%p3027_p1), %s2839_s26, 512  }
 0x37e   : > { %3397 = vsyncadd (%p3027_p1), %s2839_s26, 4294966784  ;;  %s22_s17 = sadd.s32 1, %s4188_s12   ;;  %s4189_s27 = sld [smem:[#allocation13_spill]] }
 0x37f   : > { %p19_p2 = scmp.ge.s32.totalorder %s22_s17, 4   ;;  %s4190_s14 = sld [smem:[#allocation17_spill]] }
 0x380   : > { %s4191_s15 = sld [smem:[#allocation14_spill]]  ;;  %s4193_s12 = smov %s3404_s13 }
 0x381   : > { %s4192_s16 = sld [smem:[#allocation16_spill]]  ;;  %21 = sbr.rel (!%p19_p2) target bundleno = 10 (0xa), region = 101 }
 0x384   : > { %s4194_s13 = smov %s4189_s27 }
 0x386   :  { %2845 = vsyncpa [#allocation3], 1 }
 0x387   :  { %2847 = vsyncpa [#allocation3 + $0x1], 1 }
 0x388   :  { %2848 = vsyncpa [#allocation6], 1 }
 0x389   :  { %2850 = vsyncpa [#allocation6 + $0x1], 1 }
 0x38a   :  { %2851 = vsyncpa [#allocation4], 1 }
 0x38b   :  { %2853 = vsyncpa [#allocation4 + $0x1], 1 }

</bundles_post_ra>
